<compile_context>
chip_gen: v5e
topology: v5e:2x2
jax: 0.10.0
libtpu: 0.0.40
codegen_flags: <defaults>
</compile_context>

<pallas_src>
import jax
import jax.numpy as jnp
from jax import lax
from jax.experimental import pallas as pl
from jax.experimental.pallas import tpu as pltpu

EPS = 1e-5


def _make_kernel(Nb, H, WC, conv_dtype):
    M = Nb * H

    def kernel(x_ref, w1_ref, w2_ref, mavg_ref, prm_ref, out_ref):
        prm = prm_ref[...]                                   # (8, WC) f32
        in_g,  in_b  = prm[0:1, :], prm[1:2, :]
        bn1_s, bn1_b = prm[2:3, :], prm[3:4, :]
        bn2_s, bn2_b = prm[4:5, :], prm[5:6, :]

        # Hoisted halo masks: row r belongs to sample r // H.  The shifted conv
        # taps must be zero at each sample's first ("up") / last ("dn") row.
        row = lax.broadcasted_iota(jnp.int32, (M, WC), 0)
        up_mask = (row % H) != 0
        dn_mask = (row % H) != (H - 1)

        def conv3x3(inp2d, w_ref):
            # One (M, WC) x (WC, 3*WC) MXU matmul (kh taps stacked along N);
            # activation cast to the MXU dtype exactly once.  Row halo applied
            # on the f32 results with pltpu.roll + mask select.
            r = jnp.dot(inp2d.astype(conv_dtype), w_ref[...],
                        preferred_element_type=jnp.float32)      # (M, 3*WC) f32
            up = jnp.where(up_mask, pltpu.roll(r[:, :WC], 1, 0), 0.0)
            dn = jnp.where(dn_mask, pltpu.roll(r[:, 2 * WC:], M - 1, 0), 0.0)
            return up + r[:, WC:2 * WC] + dn                     # (M, WC) f32

        x3 = x_ref[...]                                          # (Nb, H, WC) f32
        x2 = x3.reshape(M, WC)

        # ---- conv1 (3x3, stride 1, pad 1) ----
        out1 = conv3x3(x2, w1_ref)
        o3 = out1.reshape(Nb, H, WC)

        # ---- IBN stats: per-sample sublane reduce over H, then one fused
        # (2*Nb, WC) x (WC, WC) channel-averaging matmul for mean and E[x^2].
        s1 = jnp.sum(o3, axis=1)                                 # (Nb, WC)
        s2 = jnp.sum(o3 * o3, axis=1)                            # (Nb, WC)
        stats = jnp.dot(jnp.concatenate([s1, s2], axis=0), mavg_ref[...],
                        preferred_element_type=jnp.float32)      # (2*Nb, WC)
        mu = stats[:Nb][:, None, :]                              # (Nb, 1, WC)
        ex2 = stats[Nb:][:, None, :]
        var = jnp.maximum(ex2 - mu * mu, 0.0)                    # clamp: no NaN in rsqrt
        inv = lax.rsqrt(var + EPS)

        # IN on c < C/2, eval-BN on c >= C/2 via complementary zero-masked params.
        mixed = (o3 - mu) * (inv * in_g) + in_b + o3 * bn1_s + bn1_b
        mixed = jnp.maximum(mixed, 0.0).reshape(M, WC)           # relu

        # ---- conv2 + BN2 + residual + relu ----
        out2 = conv3x3(mixed, w2_ref)
        res = jnp.maximum(out2 * bn2_s + bn2_b + x2, 0.0)
        out_ref[...] = res.reshape(Nb, H, WC)

    return kernel


def _band_weights(w_hwio, W):
    """(3,3,Ci,Co) HWIO conv weight -> (W*Ci, 3*W*Co).

    For each kh, a (W*Ci, W*Co) banded matrix applies the kw/ci taps on a
    lane-dense (W*C) row (zero pad over W implicit in the band structure);
    the three kh blocks are stacked along the output dim so a single matmul
    produces all three tap results (shift + sum done on the f32 outputs)."""
    _, _, Ci, Co = w_hwio.shape
    w_in = jnp.arange(W)[:, None]
    w_out = jnp.arange(W)[None, :]
    kw = w_in - w_out + 1                                   # (W, W)
    valid = (kw >= 0) & (kw <= 2)
    g = w_hwio[:, jnp.clip(kw, 0, 2)]                       # (3, W, W, Ci, Co)
    g = jnp.where(valid[None, :, :, None, None], g, 0.0)
    band = jnp.transpose(g, (0, 1, 3, 2, 4)).reshape(3, W * Ci, W * Co)
    return jnp.transpose(band, (1, 0, 2)).reshape(W * Ci, 3 * W * Co)


def basic_block_ibn_lane_dense(x_l, w1_big, w2_big, mavg, prm, *,
                               conv_dtype, block_n):
    """Core fused block on the lane-dense layout x_l: (N, H, W*C) f32."""
    N, H, WC = x_l.shape
    assert N % block_n == 0
    kernel = _make_kernel(block_n, H, WC, conv_dtype)
    return pl.pallas_call(
        kernel,
        out_shape=jax.ShapeDtypeStruct((N, H, WC), jnp.float32),
        grid_spec=pltpu.PrefetchScalarGridSpec(
            num_scalar_prefetch=0,
            grid=(N // block_n,),
            in_specs=[
                pl.BlockSpec((block_n, H, WC), lambda n: (n, 0, 0)),  # x (input + residual)
                pl.BlockSpec((WC, 3 * WC), lambda n: (0, 0)),         # conv1 banded weights
                pl.BlockSpec((WC, 3 * WC), lambda n: (0, 0)),         # conv2 banded weights
                pl.BlockSpec((WC, WC), lambda n: (0, 0)),             # channel averager
                pl.BlockSpec((8, WC), lambda n: (0, 0)),              # per-lane affine params
            ],
            out_specs=pl.BlockSpec((block_n, H, WC), lambda n: (n, 0, 0)),
        ),
        compiler_params=pltpu.CompilerParams(
            dimension_semantics=("parallel",)),
    )(x_l, w1_big, w2_big, mavg, prm)


def basic_block_ibn_forward(x_nchw, w1_oihw, w2_oihw,
                            in_gamma, in_beta,
                            bn1_g, bn1_b, bn1_m, bn1_v,
                            bn2_g, bn2_b, bn2_m, bn2_v,
                            *, conv_dtype=jnp.bfloat16):
    """Fused BasicBlock_IBN forward (ibn='a', stride=1, no downsample), NCHW API.

    conv_dtype: MXU operand dtype (bf16 default: native on v5e/v6e/v7x);
    accumulation and IBN/BN elementwise math stay f32."""
    N, C, H, W = x_nchw.shape
    half = C // 2
    WC = W * C
    f32 = jnp.float32
    assert WC % 128 == 0 and H % 8 == 0, "lane-dense layout needs W*C % 128 == 0, H % 8 == 0"
    block_n = next(b for b in (8, 4, 2, 1) if N % b == 0)

    # NOTE: in a full ResNet-IBN keep activations lane-dense (N, H, W*C) across
    # consecutive blocks (call basic_block_ibn_lane_dense directly); the two
    # transposes below are HBM round-trips that belong at network boundaries.
    x_l = jnp.transpose(x_nchw, (0, 2, 3, 1)).reshape(N, H, WC).astype(f32)

    # One-time weight transform (OIHW -> HWIO -> kh-stacked banded matrices).
    w1_big = _band_weights(jnp.transpose(w1_oihw, (2, 3, 1, 0)), W).astype(conv_dtype)
    w2_big = _band_weights(jnp.transpose(w2_oihw, (2, 3, 1, 0)), W).astype(conv_dtype)

    # Channel-averaging matrix: (rowsum @ mavg)[w*C+c] = mean over HxW of channel c.
    lane = jnp.arange(WC)
    mavg = ((lane[:, None] % C) == (lane[None, :] % C)).astype(f32) / (H * W)

    # Per-lane affine params (masked so IN only touches c < half, BN1 c >= half).
    bn1_scale = bn1_g / jnp.sqrt(bn1_v + EPS)
    bn1_shift = bn1_b - bn1_m * bn1_scale
    bn2_scale = bn2_g / jnp.sqrt(bn2_v + EPS)
    bn2_shift = bn2_b - bn2_m * bn2_scale
    zh = jnp.zeros((half,), f32)
    zr = jnp.zeros((C - half,), f32)
    rows = [
        jnp.concatenate([in_gamma, zr]),       # IN gamma  (0 on BN half)
        jnp.concatenate([in_beta, zr]),        # IN beta
        jnp.concatenate([zh, bn1_scale]),      # BN1 scale (0 on IN half)
        jnp.concatenate([zh, bn1_shift]),      # BN1 shift
        bn2_scale, bn2_shift,
        jnp.zeros((C,), f32), jnp.zeros((C,), f32),
    ]
    prm = jnp.stack([jnp.tile(r.astype(f32), W) for r in rows])   # (8, WC)

    out = basic_block_ibn_lane_dense(x_l, w1_big, w2_big, mavg, prm,
                                     conv_dtype=conv_dtype, block_n=block_n)
    return jnp.transpose(out.reshape(N, H, W, C), (0, 3, 1, 2))


def ref_forward_nchw(x, w1_oihw, w2_oihw, in_gamma, in_beta,
                     bn1_g, bn1_b, bn1_m, bn1_v,
                     bn2_g, bn2_b, bn2_m, bn2_v, half):
    """Pure-JAX reference mirroring the PyTorch module (eval-mode BN)."""
    def bcast(p):
        return p[None, :, None, None]

    out = lax.conv_general_dilated(x, w1_oihw, (1, 1), 'SAME',
                                   dimension_numbers=('NCHW', 'OIHW', 'NCHW'))
    x_in, x_bn = out[:, :half], out[:, half:]
    mu = jnp.mean(x_in, axis=(2, 3), keepdims=True)
    var = jnp.var(x_in, axis=(2, 3), keepdims=True)
    x_in = (x_in - mu) / jnp.sqrt(var + EPS) * bcast(in_gamma) + bcast(in_beta)
    x_bn = (x_bn - bcast(bn1_m)) / jnp.sqrt(bcast(bn1_v) + EPS) * bcast(bn1_g) + bcast(bn1_b)
    out = jnp.concatenate([x_in, x_bn], axis=1)
    out = jnp.maximum(out, 0.0)
    out = lax.conv_general_dilated(out, w2_oihw, (1, 1), 'SAME',
                                   dimension_numbers=('NCHW', 'OIHW', 'NCHW'))
    out = (out - bcast(bn2_m)) / jnp.sqrt(bcast(bn2_v) + EPS) * bcast(bn2_g) + bcast(bn2_b)
    out = out + x
    return jnp.maximum(out, 0.0)


if __name__ == "__main__":
    # inplanes == planes == 8, stride=1, W*C = 128; N=16 -> Nb=8 sample blocks,
    # conv matmul M = Nb*H = 128, grid = (2,).
    N, C, H, W = 16, 8, 16, 16
    half = C // 2

    key = jax.random.PRNGKey(0)
    ks = jax.random.split(key, 13)

    x_nchw = jax.random.normal(ks[0], (N, C, H, W), jnp.float32)

    # conv weights (PyTorch OIHW layout), bias=False
    w1_oihw = jax.random.normal(ks[1], (C, C, 3, 3), jnp.float32) * 0.1
    w2_oihw = jax.random.normal(ks[2], (C, C, 3, 3), jnp.float32) * 0.1

    # InstanceNorm2d(half, affine=True)
    in_gamma = 1.0 + 0.1 * jax.random.normal(ks[3], (half,), jnp.float32)
    in_beta = 0.1 * jax.random.normal(ks[4], (half,), jnp.float32)
    # BatchNorm2d(C - half)  (eval mode: running stats)
    bn1_g = 1.0 + 0.1 * jax.random.normal(ks[5], (C - half,), jnp.float32)
    bn1_b = 0.1 * jax.random.normal(ks[6], (C - half,), jnp.float32)
    bn1_m = 0.1 * jax.random.normal(ks[7], (C - half,), jnp.float32)
    bn1_v = 0.5 + jnp.abs(jax.random.normal(ks[8], (C - half,), jnp.float32))
    # BatchNorm2d(C)
    bn2_g = 1.0 + 0.1 * jax.random.normal(ks[9], (C,), jnp.float32)
    bn2_b = 0.1 * jax.random.normal(ks[10], (C,), jnp.float32)
    bn2_m = 0.1 * jax.random.normal(ks[11], (C,), jnp.float32)
    bn2_v = 0.5 + jnp.abs(jax.random.normal(ks[12], (C,), jnp.float32))

    args = (x_nchw, w1_oihw, w2_oihw, in_gamma, in_beta,
            bn1_g, bn1_b, bn1_m, bn1_v, bn2_g, bn2_b, bn2_m, bn2_v)

    ref = jax.block_until_ready(ref_forward_nchw(*args, half))

    # Tight correctness check on the f32 MXU path.
    out_f32 = jax.block_until_ready(
        basic_block_ibn_forward(*args, conv_dtype=jnp.float32))
    err_f32 = float(jnp.max(jnp.abs(out_f32 - ref)))
    assert jnp.allclose(out_f32, ref, atol=5e-3, rtol=5e-3), \
        f"f32 path max abs err {err_f32}"

    # Fast default path: bf16 MXU operands (f32 accumulation / norm math).
    out_bf16 = jax.block_until_ready(basic_block_ibn_forward(*args))
    err_bf16 = float(jnp.max(jnp.abs(out_bf16 - ref)))
    assert jnp.allclose(out_bf16, ref, atol=5e-2, rtol=5e-2), \
        f"bf16 path max abs err {err_bf16}"

    print("KERNEL_OK")
</pallas_src>

<mosaic_0001>
module attributes {stable_mosaic.version = 11 : i64} {
  func.func @kernel(%arg0: i32, %arg1: memref<8x16x128xf32, #tpu.memory_space<vmem>>, %arg2: memref<128x384xf32, #tpu.memory_space<vmem>>, %arg3: memref<128x384xf32, #tpu.memory_space<vmem>>, %arg4: memref<128x128xf32, #tpu.memory_space<vmem>>, %arg5: memref<8x128xf32, #tpu.memory_space<vmem>>, %arg6: memref<8x16x128xf32, #tpu.memory_space<vmem>>) attributes {dimension_semantics = [#tpu.dimension_semantics<parallel>], iteration_bounds = array<i64: 2>, scalar_prefetch = 0 : i64, scratch_operands = 0 : i64, tpu.core_type = #tpu.core_type<tc>, window_params = [{transform_indices = @transform_0, window_bounds = array<i64: 8, 16, 128>}, {pipeline_mode = #tpu.pipeline_mode<synchronous>, transform_indices = @transform_1, window_bounds = array<i64: 128, 384>}, {pipeline_mode = #tpu.pipeline_mode<synchronous>, transform_indices = @transform_2, window_bounds = array<i64: 128, 384>}, {pipeline_mode = #tpu.pipeline_mode<synchronous>, transform_indices = @transform_3, window_bounds = array<i64: 128, 128>}, {pipeline_mode = #tpu.pipeline_mode<synchronous>, transform_indices = @transform_4, window_bounds = array<i64: 8, 128>}, {transform_indices = @transform_5, window_bounds = array<i64: 8, 16, 128>}]} {
    %c0 = arith.constant 0 : index
    %c0_0 = arith.constant 0 : index
    %0 = vector.load %arg5[%c0, %c0_0] : memref<8x128xf32, #tpu.memory_space<vmem>>, vector<8x128xf32>
    %1 = vector.extract_strided_slice %0 {offsets = [0, 0], sizes = [1, 128], strides = [1, 1]} : vector<8x128xf32> to vector<1x128xf32>
    %2 = vector.extract_strided_slice %0 {offsets = [1, 0], sizes = [1, 128], strides = [1, 1]} : vector<8x128xf32> to vector<1x128xf32>
    %3 = vector.extract_strided_slice %0 {offsets = [2, 0], sizes = [1, 128], strides = [1, 1]} : vector<8x128xf32> to vector<1x128xf32>
    %4 = vector.extract_strided_slice %0 {offsets = [3, 0], sizes = [1, 128], strides = [1, 1]} : vector<8x128xf32> to vector<1x128xf32>
    %5 = vector.extract_strided_slice %0 {offsets = [4, 0], sizes = [1, 128], strides = [1, 1]} : vector<8x128xf32> to vector<1x128xf32>
    %6 = vector.extract_strided_slice %0 {offsets = [5, 0], sizes = [1, 128], strides = [1, 1]} : vector<8x128xf32> to vector<1x128xf32>
    %7 = tpu.iota {dimensions = array<i32: 0>} : vector<128x128xi32>
    %c16_i32 = arith.constant 16 : i32
    %c0_i32 = arith.constant 0 : i32
    %8 = arith.cmpi eq, %c16_i32, %c0_i32 : i32
    %c1_i32 = arith.constant 1 : i32
    %9 = arith.select %8, %c1_i32, %c16_i32 : i32
    %10 = vector.broadcast %9 : i32 to vector<128x128xi32>
    %11 = arith.remsi %7, %10 : vector<128x128xi32>
    %c0_i32_1 = arith.constant 0 : i32
    %12 = vector.broadcast %c0_i32_1 : i32 to vector<128x128xi32>
    %13 = arith.cmpi ne, %11, %12 : vector<128x128xi32>
    %c0_i32_2 = arith.constant 0 : i32
    %14 = vector.broadcast %c0_i32_2 : i32 to vector<128x128xi32>
    %15 = arith.cmpi slt, %11, %14 : vector<128x128xi32>
    %c0_i32_3 = arith.constant 0 : i32
    %16 = arith.cmpi slt, %9, %c0_i32_3 : i32
    %17 = vector.broadcast %16 : i1 to vector<128x128xi1>
    %18 = vector.broadcast %17 : vector<128x128xi1> to vector<128x128xi1>
    %19 = arith.xori %15, %18 : vector<128x128xi1>
    %20 = arith.andi %19, %13 : vector<128x128xi1>
    %21 = vector.broadcast %9 : i32 to vector<128x128xi32>
    %22 = arith.addi %11, %21 : vector<128x128xi32>
    %23 = arith.select %20, %22, %11 : vector<128x128xi1>, vector<128x128xi32>
    %c0_i32_4 = arith.constant 0 : i32
    %24 = vector.broadcast %c0_i32_4 : i32 to vector<128x128xi32>
    %25 = arith.cmpi ne, %23, %24 : vector<128x128xi32>
    %c16_i32_5 = arith.constant 16 : i32
    %c0_i32_6 = arith.constant 0 : i32
    %26 = arith.cmpi eq, %c16_i32_5, %c0_i32_6 : i32
    %c1_i32_7 = arith.constant 1 : i32
    %27 = arith.select %26, %c1_i32_7, %c16_i32_5 : i32
    %28 = vector.broadcast %27 : i32 to vector<128x128xi32>
    %29 = arith.remsi %7, %28 : vector<128x128xi32>
    %c0_i32_8 = arith.constant 0 : i32
    %30 = vector.broadcast %c0_i32_8 : i32 to vector<128x128xi32>
    %31 = arith.cmpi ne, %29, %30 : vector<128x128xi32>
    %c0_i32_9 = arith.constant 0 : i32
    %32 = vector.broadcast %c0_i32_9 : i32 to vector<128x128xi32>
    %33 = arith.cmpi slt, %29, %32 : vector<128x128xi32>
    %c0_i32_10 = arith.constant 0 : i32
    %34 = arith.cmpi slt, %27, %c0_i32_10 : i32
    %35 = vector.broadcast %34 : i1 to vector<128x128xi1>
    %36 = vector.broadcast %35 : vector<128x128xi1> to vector<128x128xi1>
    %37 = arith.xori %33, %36 : vector<128x128xi1>
    %38 = arith.andi %37, %31 : vector<128x128xi1>
    %39 = vector.broadcast %27 : i32 to vector<128x128xi32>
    %40 = arith.addi %29, %39 : vector<128x128xi32>
    %41 = arith.select %38, %40, %29 : vector<128x128xi1>, vector<128x128xi32>
    %c15_i32 = arith.constant 15 : i32
    %42 = vector.broadcast %c15_i32 : i32 to vector<128x128xi32>
    %43 = arith.cmpi ne, %41, %42 : vector<128x128xi32>
    %c0_11 = arith.constant 0 : index
    %c0_12 = arith.constant 0 : index
    %c0_13 = arith.constant 0 : index
    %44 = vector.load %arg1[%c0_11, %c0_12, %c0_13] : memref<8x16x128xf32, #tpu.memory_space<vmem>>, vector<8x16x128xf32>
    %45 = vector.shape_cast %44 : vector<8x16x128xf32> to vector<128x128xf32>
    %c0_14 = arith.constant 0 : index
    %c0_15 = arith.constant 0 : index
    %46 = vector.load %arg2[%c0_14, %c0_15] : memref<128x384xf32, #tpu.memory_space<vmem>>, vector<128x384xf32>
    %cst = arith.constant dense<0.000000e+00> : vector<128x384xf32>
    %47 = tpu.matmul %45, %46, %cst {dimension_numbers = #tpu.dot_dimension_numbers<[1], [0], [0], [1], [0, 0, 1, 1], [], []>} : vector<128x128xf32>, vector<128x384xf32>, vector<128x384xf32> -> vector<128x384xf32>
    %48 = vector.extract_strided_slice %47 {offsets = [0, 0], sizes = [128, 128], strides = [1, 1]} : vector<128x384xf32> to vector<128x128xf32>
    %c1_i32_16 = arith.constant 1 : i32
    %49 = tpu.dynamic_rotate %48 by %c1_i32_16 dim 0 : vector<128x128xf32>, i32 -> vector<128x128xf32>
    %cst_17 = arith.constant 0.000000e+00 : f32
    %50 = vector.broadcast %cst_17 : f32 to vector<128x128xf32>
    %51 = arith.select %25, %49, %50 : vector<128x128xi1>, vector<128x128xf32>
    %52 = vector.extract_strided_slice %47 {offsets = [0, 256], sizes = [128, 128], strides = [1, 1]} : vector<128x384xf32> to vector<128x128xf32>
    %c127_i32 = arith.constant 127 : i32
    %53 = tpu.dynamic_rotate %52 by %c127_i32 dim 0 : vector<128x128xf32>, i32 -> vector<128x128xf32>
    %cst_18 = arith.constant 0.000000e+00 : f32
    %54 = vector.broadcast %cst_18 : f32 to vector<128x128xf32>
    %55 = arith.select %43, %53, %54 : vector<128x128xi1>, vector<128x128xf32>
    %56 = vector.extract_strided_slice %47 {offsets = [0, 128], sizes = [128, 128], strides = [1, 1]} : vector<128x384xf32> to vector<128x128xf32>
    %57 = arith.addf %51, %56 : vector<128x128xf32>
    %58 = arith.addf %57, %55 : vector<128x128xf32>
    %59 = vector.shape_cast %58 : vector<128x128xf32> to vector<8x16x128xf32>
    %cst_19 = arith.constant dense<0.000000e+00> : vector<8x128xf32>
    %60 = vector.multi_reduction <add>, %59, %cst_19 [1] : vector<8x16x128xf32> to vector<8x128xf32>
    %61 = arith.mulf %59, %59 : vector<8x16x128xf32>
    %cst_20 = arith.constant dense<0.000000e+00> : vector<8x128xf32>
    %62 = vector.multi_reduction <add>, %61, %cst_20 [1] : vector<8x16x128xf32> to vector<8x128xf32>
    %63 = tpu.concatenate %60, %62 in 0 : vector<8x128xf32>, vector<8x128xf32> -> vector<16x128xf32>
    %c0_21 = arith.constant 0 : index
    %c0_22 = arith.constant 0 : index
    %64 = vector.load %arg4[%c0_21, %c0_22] : memref<128x128xf32, #tpu.memory_space<vmem>>, vector<128x128xf32>
    %cst_23 = arith.constant dense<0.000000e+00> : vector<16x128xf32>
    %65 = tpu.matmul %63, %64, %cst_23 {dimension_numbers = #tpu.dot_dimension_numbers<[1], [0], [0], [1], [0, 0, 1, 1], [], []>} : vector<16x128xf32>, vector<128x128xf32>, vector<16x128xf32> -> vector<16x128xf32>
    %66 = vector.extract_strided_slice %65 {offsets = [0, 0], sizes = [8, 128], strides = [1, 1]} : vector<16x128xf32> to vector<8x128xf32>
    %67 = vector.shape_cast %66 : vector<8x128xf32> to vector<8x1x128xf32>
    %68 = vector.extract_strided_slice %65 {offsets = [8, 0], sizes = [8, 128], strides = [1, 1]} : vector<16x128xf32> to vector<8x128xf32>
    %69 = vector.shape_cast %68 : vector<8x128xf32> to vector<8x1x128xf32>
    %70 = arith.mulf %67, %67 : vector<8x1x128xf32>
    %71 = arith.subf %69, %70 : vector<8x1x128xf32>
    %cst_24 = arith.constant 0.000000e+00 : f32
    %72 = vector.broadcast %cst_24 : f32 to vector<8x1x128xf32>
    %73 = arith.maximumf %71, %72 : vector<8x1x128xf32>
    %cst_25 = arith.constant 9.99999974E-6 : f32
    %74 = vector.broadcast %cst_25 : f32 to vector<8x1x128xf32>
    %75 = arith.addf %73, %74 : vector<8x1x128xf32>
    %76 = math.rsqrt %75 : vector<8x1x128xf32>
    %77 = vector.broadcast %67 : vector<8x1x128xf32> to vector<8x16x128xf32>
    %78 = arith.subf %59, %77 : vector<8x16x128xf32>
    %79 = vector.shape_cast %1 : vector<1x128xf32> to vector<1x1x128xf32>
    %80 = vector.broadcast %79 : vector<1x1x128xf32> to vector<8x1x128xf32>
    %81 = arith.mulf %76, %80 : vector<8x1x128xf32>
    %82 = vector.broadcast %81 : vector<8x1x128xf32> to vector<8x16x128xf32>
    %83 = arith.mulf %78, %82 : vector<8x16x128xf32>
    %84 = vector.shape_cast %2 : vector<1x128xf32> to vector<1x1x128xf32>
    %85 = vector.broadcast %84 : vector<1x1x128xf32> to vector<8x16x128xf32>
    %86 = arith.addf %83, %85 : vector<8x16x128xf32>
    %87 = vector.shape_cast %3 : vector<1x128xf32> to vector<1x1x128xf32>
    %88 = vector.broadcast %87 : vector<1x1x128xf32> to vector<8x16x128xf32>
    %89 = arith.mulf %59, %88 : vector<8x16x128xf32>
    %90 = arith.addf %86, %89 : vector<8x16x128xf32>
    %91 = vector.shape_cast %4 : vector<1x128xf32> to vector<1x1x128xf32>
    %92 = vector.broadcast %91 : vector<1x1x128xf32> to vector<8x16x128xf32>
    %93 = arith.addf %90, %92 : vector<8x16x128xf32>
    %cst_26 = arith.constant 0.000000e+00 : f32
    %94 = vector.broadcast %cst_26 : f32 to vector<8x16x128xf32>
    %95 = arith.maximumf %93, %94 : vector<8x16x128xf32>
    %96 = vector.shape_cast %95 : vector<8x16x128xf32> to vector<128x128xf32>
    %c0_27 = arith.constant 0 : index
    %c0_28 = arith.constant 0 : index
    %97 = vector.load %arg3[%c0_27, %c0_28] : memref<128x384xf32, #tpu.memory_space<vmem>>, vector<128x384xf32>
    %cst_29 = arith.constant dense<0.000000e+00> : vector<128x384xf32>
    %98 = tpu.matmul %96, %97, %cst_29 {dimension_numbers = #tpu.dot_dimension_numbers<[1], [0], [0], [1], [0, 0, 1, 1], [], []>} : vector<128x128xf32>, vector<128x384xf32>, vector<128x384xf32> -> vector<128x384xf32>
    %99 = vector.extract_strided_slice %98 {offsets = [0, 0], sizes = [128, 128], strides = [1, 1]} : vector<128x384xf32> to vector<128x128xf32>
    %c1_i32_30 = arith.constant 1 : i32
    %100 = tpu.dynamic_rotate %99 by %c1_i32_30 dim 0 : vector<128x128xf32>, i32 -> vector<128x128xf32>
    %cst_31 = arith.constant 0.000000e+00 : f32
    %101 = vector.broadcast %cst_31 : f32 to vector<128x128xf32>
    %102 = arith.select %25, %100, %101 : vector<128x128xi1>, vector<128x128xf32>
    %103 = vector.extract_strided_slice %98 {offsets = [0, 256], sizes = [128, 128], strides = [1, 1]} : vector<128x384xf32> to vector<128x128xf32>
    %c127_i32_32 = arith.constant 127 : i32
    %104 = tpu.dynamic_rotate %103 by %c127_i32_32 dim 0 : vector<128x128xf32>, i32 -> vector<128x128xf32>
    %cst_33 = arith.constant 0.000000e+00 : f32
    %105 = vector.broadcast %cst_33 : f32 to vector<128x128xf32>
    %106 = arith.select %43, %104, %105 : vector<128x128xi1>, vector<128x128xf32>
    %107 = vector.extract_strided_slice %98 {offsets = [0, 128], sizes = [128, 128], strides = [1, 1]} : vector<128x384xf32> to vector<128x128xf32>
    %108 = arith.addf %102, %107 : vector<128x128xf32>
    %109 = arith.addf %108, %106 : vector<128x128xf32>
    %110 = vector.broadcast %5 : vector<1x128xf32> to vector<128x128xf32>
    %111 = arith.mulf %109, %110 : vector<128x128xf32>
    %112 = vector.broadcast %6 : vector<1x128xf32> to vector<128x128xf32>
    %113 = arith.addf %111, %112 : vector<128x128xf32>
    %114 = arith.addf %113, %45 : vector<128x128xf32>
    %cst_34 = arith.constant 0.000000e+00 : f32
    %115 = vector.broadcast %cst_34 : f32 to vector<128x128xf32>
    %116 = arith.maximumf %114, %115 : vector<128x128xf32>
    %117 = vector.shape_cast %116 : vector<128x128xf32> to vector<8x16x128xf32>
    %c0_35 = arith.constant 0 : index
    %c0_36 = arith.constant 0 : index
    %c0_37 = arith.constant 0 : index
    %118 = vector.load %arg6[%c0_35, %c0_36, %c0_37] : memref<8x16x128xf32, #tpu.memory_space<vmem>>, vector<8x16x128xf32>
    tpu.vector_store %arg6[%c0_35, %c0_36, %c0_37], %117 {strides = array<i32>} : memref<8x16x128xf32, #tpu.memory_space<vmem>>, vector<8x16x128xf32>,
    return
  }
  func.func @transform_0(%arg0: i32) -> (i32, i32, i32) {
    %c0_i32 = arith.constant 0 : i32
    %c0_i32_0 = arith.constant 0 : i32
    %c0_i32_1 = arith.constant 0 : i32
    return %arg0, %c0_i32, %c0_i32_0 : i32, i32, i32
  }
  func.func @transform_1(%arg0: i32) -> (i32, i32) {
    %c0_i32 = arith.constant 0 : i32
    %c0_i32_0 = arith.constant 0 : i32
    %c0_i32_1 = arith.constant 0 : i32
    return %c0_i32, %c0_i32_0 : i32, i32
  }
  func.func @transform_2(%arg0: i32) -> (i32, i32) {
    %c0_i32 = arith.constant 0 : i32
    %c0_i32_0 = arith.constant 0 : i32
    %c0_i32_1 = arith.constant 0 : i32
    return %c0_i32, %c0_i32_0 : i32, i32
  }
  func.func @transform_3(%arg0: i32) -> (i32, i32) {
    %c0_i32 = arith.constant 0 : i32
    %c0_i32_0 = arith.constant 0 : i32
    %c0_i32_1 = arith.constant 0 : i32
    return %c0_i32, %c0_i32_0 : i32, i32
  }
  func.func @transform_4(%arg0: i32) -> (i32, i32) {
    %c0_i32 = arith.constant 0 : i32
    %c0_i32_0 = arith.constant 0 : i32
    %c0_i32_1 = arith.constant 0 : i32
    return %c0_i32, %c0_i32_0 : i32, i32
  }
  func.func @transform_5(%arg0: i32) -> (i32, i32, i32) {
    %c0_i32 = arith.constant 0 : i32
    %c0_i32_0 = arith.constant 0 : i32
    %c0_i32_1 = arith.constant 0 : i32
    return %arg0, %c0_i32, %c0_i32_0 : i32, i32, i32
  }
}

</mosaic_0001>

<bundles_post_ra>
// kernel: tpu_custom_call.1
= control target key start
LH: loop header
LB: loop body
LE: loop exit
PB: predicated region body
PF: predicated region fallthrough
CT: control target
= control target key end

     0   :  { %10 = vsyncpa [#allocation3], 0  ;;  %s3661_s0 = inlined_call_operand.hbm [shape: f32[16,16,128], index: 0, kind: input, shape index: {}]   ;;  %s3662_s1 = inlined_call_operand.hbm [shape: f32[128,384], index: 1, kind: input, shape index: {}]   ;;  %s3663_s2 = inlined_call_operand.hbm [shape: f32[128,384], index: 2, kind: input, shape index: {}]   ;;  %s3664_s3 = inlined_call_operand.hbm [shape: f32[128,128], index: 3, kind: input, shape index: {}]   ;;  %s3665_s4 = inlined_call_operand.hbm [shape: f32[8,128], index: 4, kind: input, shape index: {}]   ;;  %s3666_s5 = inlined_call_operand.hbm [shape: f32[16,16,128], index: 5, kind: output, shape index: {}]  }
   0x1   :  { %12 = vsyncpa [#allocation3 + $0x1], 0 }
   0x2   :  { %13 = vsyncpa [#allocation6], 0 }
   0x3   :  { %14 = vsyncpa [#allocation9], 0 }
   0x4   :  { %15 = vsyncpa [#allocation4], 0 }
   0x5   :  { %17 = vsyncpa [#allocation4 + $0x1], 0  ;;  %s2486_s18 = smov 0   ;;  %s2488_s19 = smov 0  }
   0x6   :  { %s2490_s20 = smov 0   ;;  %s2492_s21 = smov 0  }
   0x7 LB: > { %s2507_s22 = sadd.s32 4294967295, %s2444_s21   ;;  %s2035_s23 = sadd.s32 4294967294, %s2444_s21   ;;  %s2444_s21 = sphi %s2492_s21, %s3837_s21   ;;  %s2440_s20 = sphi %s2490_s20, %s3836_s20   ;;  %s2436_s19 = sphi %s2488_s19, %s3835_s19   ;;  %s2432_s18 = sphi %s2486_s18, %s3834_s18  }
   0x8   : > { %p43_p0 = scmp.ne.s32.totalorder %s2436_s19, %s2432_s18  ;;  %p44_p1 = scmp.eq.s32.totalorder %s2507_s22, 0 }
   0x9   : > { %p151_p2 = scmp.eq.s32.totalorder %s2507_s22, 1  ;;  %p157_p3 = scmp.eq.s32.totalorder %s2035_s23, 1 }
   0xa   : > { %p2516_p4 = por %p44_p1, %p43_p0  ;;  %p2036_p5 = scmp.ge.s32.totalorder %s2444_s21, 1 }
   0xb   : > { %p2521_p6 = por %p157_p3, %p43_p0  ;;  %p164_p7 = scmp.lt.s32.totalorder %s2444_s21, 3 }
   0xc   : > { %s175_s28 = sshll.u32 %s3662_s1, 4  ;;  %s2446_s30 = smov [#allocation5]   ;;  %s176_s28 = int_to_ptr.hbm [resolvable:$true] %s175_s28 }
   0xd   : > { %p2529_p8 = pnand %p2036_p5, %p164_p7  ;;  %s177_s6 = sshll.u32 %s2446_s30, 4  ;;  %s178_s6 = int_to_ptr.vmem [resolvable:$true] %s177_s6 }
   0xe   : > { %s203_s10 = sshll.u32 %s3664_s3, 4  ;;  %s2447_s11 = smov 384   ;;  %s204_s10 = int_to_ptr.hbm [resolvable:$true] %s203_s10 }
   0xf   : > { %p2115_p9 = pneg %p2529_p8  ;;  %s2448_s12 = smov 24  }
  0x10   : > { %s2449_s13 = smov [#allocation8]   ;;  %s3667_s15 = smov 128  }
  0x11   : > { %p2537_p10 = pnand %p2115_p9, %p44_p1  ;;  %s205_s14 = sshll.u32 %s2449_s13, 4  ;;  %s206_s14 = int_to_ptr.vmem [resolvable:$true] %s205_s14 }
  0x12   : > { %s2451_s16 = smov 8   ;;  %s189_s26 = sshll.u32 %s3663_s2, 4  ;;  %s190_s26 = int_to_ptr.hbm [resolvable:$true] %s189_s26 }
  0x13   : > { %2118 = dma.hbm_to_vmem [thread:$0]  (!%p2537_p10), %s176_s28, 6144, %s178_s6, [#allocation6], %s2447_s11, %s2447_s11, %s2448_s12  }
  0x14   : > { %2124 = dma.hbm_to_vmem [thread:$0]  (!%p2537_p10), %s204_s10, 2048, %s206_s14, [#allocation9], %s3667_s15, %s3667_s15, %s2451_s16  }
  0x15   : > { %s2452_s27 = smov [#allocation7]   ;;  %s218_s8 = sshll.u32 %s3665_s4, 4  ;;  %s219_s8 = int_to_ptr.hbm [resolvable:$true] %s218_s8 }
  0x16   : > { %s191_s28 = sshll.u32 %s2452_s27, 4  ;;  %s2453_s9 = smov [#allocation10]   ;;  %s192_s28 = int_to_ptr.vmem [resolvable:$true] %s191_s28 }
  0x17   : > { %2121 = dma.hbm_to_vmem [thread:$0]  (!%p2537_p10), %s190_s26, 6144, %s192_s28, [#allocation6], %s2447_s11, %s2447_s11, %s2448_s12  }
  0x18   : > { %s220_s10 = sshll.u32 %s2453_s9, 4  ;;  %s2563_s13 = sadd.s32 1, %s2444_s21   ;;  %s221_s10 = int_to_ptr.vmem [resolvable:$true] %s220_s10 }
  0x19   : > { %2127 = dma.hbm_to_vmem [thread:$0]  (!%p2537_p10), %s219_s8, 128, %s221_s10, [#allocation9]  }
  0x1a   : > { %s30_s14 = sadd.s32 1, %s2440_s20  ;;  %s27_s17 = ssub.s32 %s2444_s21, %s2563_s13 }
  0x1b   : > { %p37_p12 = scmp.ne.s32.totalorder %s2440_s20, %s2436_s19  ;;  %p28_p13 = scmp.eq.s32.totalorder %s27_s17, 0 }
  0x1c   : > { %p38_p0 = scmp.eq.s32.totalorder %s2444_s21, 0  ;;  %p2140_p5 = scmp.lt.s32.totalorder %s2444_s21, 2 }
  0x1d   : > { %p2573_p3 = por %p151_p2, %p37_p12  ;;  %s231_s12 = sand.u32 1, %s2440_s20  }
  0x1e   : > { %s2579_s11 = scalar_select %p28_p13, %s2440_s20, %s30_s14  }
  0x1f   : > { %p39_p7 = por %p38_p0, %p37_p12  ;;  %s2042_s7 = sshll.u32 %s231_s12, 7 }
  0x20   : > { %s2060_s26 = sshll.u32 %s2444_s21, 7  ;;  %s235_s6 = scalar_lea.vmem [#allocation2], %s2042_s7 }
  0x21   : > { %s241_s30 = scalar_lea.hbm %s3661_s0, %s2060_s26  ;;  %s244_s8 = sshll.u32 %s235_s6, 4  ;;  %s245_s8 = int_to_ptr.vmem [resolvable:$true] %s244_s8 }
  0x22   : > { %s242_s9 = sshll.u32 %s241_s30, 4  ;;  %p2586_p2 = pnand %p2140_p5, %p39_p7  ;;  %s243_s9 = int_to_ptr.hbm [resolvable:$true] %s242_s9 }
  0x23   : > { %s232_s14 = scalar_lea.sflag [#allocation3], %s231_s12  ;;  %s2340_s17 = sshra.s32 %s243_s9, 4  ;;  %s2341_s17 = int_to_ptr.hbm [resolvable:$true] %s2340_s17 }
  0x24   : > { %s2342_s15 = scalar_lea.hbm %s2341_s17, 128  ;;  %p2344_p10 = pneg %p2586_p2 }
  0x25   : > { %p2343_p9 = scmp.ne.s32.totalorder %s2341_s17, %s2342_s15  ;;  %s2347_s27 = scalar_lea.hbm %s3661_s0, 256 }
  0x26   : > { %p2348_p0 = scmp.lt.s32.totalorder %s2341_s17, %s3661_s0  ;;  %p2349_p5 = scmp.lt.s32.totalorder %s2347_s27, %s2342_s15 }
  0x27   : > { %p2345_p12 = pnand %p2344_p10, %p2343_p9 }
  0x28   : > { %p2350_p7 = por %p2349_p5, %p2348_p0 }
  0x29   : > { %p2346_p13 = pneg %p2345_p12 }
  0x2b   : > { %p2351_p11 = pnand %p2350_p7, %p2346_p13 }
  0x2d   : > { %2354 = shalt.err (!%p2351_p11)
}
  0x2e   : > { %s3705_s12 = smov 128   ;;  %256 = sbr.rel (%p2529_p8) target bundleno = 871 (0x367), region = 40 }
  0x2f   : > { %2131 = dma.hbm_to_vmem [thread:$0]  (!%p2586_p2), %s243_s9, 2048, %s245_s8, %s232_s14, %s3705_s12, %s3705_s12, %s2451_s16  }
  0x33   : > { %s2606_s6 = sand.u32 1, %s2436_s19  }
  0x34   : > { %s2047_s15 = sshll.u32 %s2606_s6, 7  ;;  %s259_s17 = scalar_lea.sflag [#allocation3], %s2606_s6 }
  0x35   : > { %s2612_s26 = scalar_lea.vmem [#allocation2], %s2047_s15 }
  0x36   : > { %2415 = dma.done.wait (%p2516_p4), %s259_s17, 2048  }
  0x37   : > { %2417 = vsyncadd (%p2516_p4), %s259_s17, 4294965248 }
  0x38   : > { %2419 = dma.done.wait (%p44_p1), [#allocation6], 12288  }
  0x39   : > { %2421 = vsyncadd (%p44_p1), [#allocation6], 4294955008 }
  0x3a   : > { %2423 = dma.done.wait (%p44_p1), [#allocation9], 2176  }
  0x3b   : > { %2425 = vsyncadd (%p44_p1), [#allocation9], 4294965120  ;;  %v615_v0 = vld [vmem:[#allocation5 + $0x168] sm:$0xff]  ;;  %v612_v1 = vld [vmem:[#allocation5 + $0x150] sm:$0xff]  ;;  %s3477_s24 = scalar_lea.vmem [#allocation11], %s2047_s15  ;;  %s2062_s29 = sshll.u32 %s2507_s22, 7 }
  0x3c   : > { %v616_v2 = vld [vmem:[#allocation5 + $0x170] sm:$0xff]  ;;  %618 = vmatpush.msra.mxu0 %v615_v0  ;;  %2063 = vmatpush.msra.mxu2 %v615_v0  ;;  %v613_v3 = vld [vmem:[#allocation5 + $0x158] sm:$0xff]  ;;  %v610_v5 = vld [vmem:[#allocation5 + $0x140] sm:$0xff]  ;;  %s1920_s9 = scalar_lea.hbm %s3666_s5, %s2062_s29  ;;  %s1921_s22 = sshll.u32 %s3477_s24, 4  ;;  %s1922_s22 = int_to_ptr.vmem [resolvable:$true] %s1921_s22 }
  0x3d   : > { %2079 = vmatpush.msra.mxu3 %v616_v2  ;;  %v609_v4 = vld [vmem:[#allocation5 + $0x138] sm:$0xff]  ;;  %683 = vmatpush.msra.mxu1 %v616_v2  ;;  %v606_v6 = vld [vmem:[#allocation5 + $0x120] sm:$0xff]  ;;  %v607_v7 = vld [vmem:[#allocation5 + $0x128] sm:$0xff]  ;;  %v313_v2 = vlaneseq  ;;  %s1923_s10 = sshll.u32 %s1920_s9, 4  ;;  %s1908_s14 = scalar_lea.sflag [#allocation4], %s2606_s6  ;;  %s1924_s10 = int_to_ptr.hbm [resolvable:$true] %s1923_s10 }
  0x3e   : > { %619 = vmatpush.msra.mxu0 %v612_v1  ;;  %2064 = vmatpush.msra.mxu2 %v612_v1  ;;  %v603_v8 = vld [vmem:[#allocation5 + $0x108] sm:$0xff]  ;;  %v604_v9 = vld [vmem:[#allocation5 + $0x110] sm:$0xff]  ;;  %v601_v11 = vld [vmem:[#allocation5 + $0xf8] sm:$0xff]  ;;  %s2384_s7 = sshra.s32 %s1924_s10, 4  ;;  %s2390_s12 = scalar_lea.hbm %s3666_s5, 256  ;;  %s2385_s7 = int_to_ptr.hbm [resolvable:$true] %s2384_s7 }
  0x3f   : > { %2080 = vmatpush.msra.mxu3 %v613_v3  ;;  %684 = vmatpush.msra.mxu1 %v613_v3  ;;  %v600_v10 = vld [vmem:[#allocation5 + $0xf0] sm:$0xff]  ;;  %v597_v12 = vld [vmem:[#allocation5 + $0xd8] sm:$0xff]  ;;  %v598_v13 = vld [vmem:[#allocation5 + $0xe0] sm:$0xff]  ;;  %v2671_v3 = vshrl.u32 %v313_v2, 7  ;;  %s2386_s27 = scalar_lea.hbm %s2385_s7, 128  ;;  %p2391_p11 = scmp.lt.s32.totalorder %s2385_s7, %s3666_s5 }
  0x40   : > { %620 = vmatpush.msra.mxu0 %v609_v4  ;;  %2065 = vmatpush.msra.mxu2 %v609_v4  ;;  %v594_v14 = vld [vmem:[#allocation5 + $0xc0] sm:$0xff]  ;;  %v595_v15 = vld [vmem:[#allocation5 + $0xc8] sm:$0xff]  ;;  %v592_v17 = vld [vmem:[#allocation5 + $0xb0] sm:$0xff]  ;;  %p2387_p1 = scmp.ne.s32.totalorder %s2385_s7, %s2386_s27  ;;  %p2392_p2 = scmp.lt.s32.totalorder %s2390_s12, %s2386_s27 }
  0x41   : > { %2081 = vmatpush.msra.mxu3 %v610_v5  ;;  %685 = vmatpush.msra.mxu1 %v610_v5  ;;  %v591_v16 = vld [vmem:[#allocation5 + $0xa8] sm:$0xff]  ;;  %v588_v18 = vld [vmem:[#allocation5 + $0x90] sm:$0xff]  ;;  %v589_v19 = vld [vmem:[#allocation5 + $0x98] sm:$0xff]  ;;  %3706 = vst [vmem:[#allocation16_spill] sm:$0xff] %v2671_v3  ;;  %vm3672_vm0 = vcmp.lt.s32.totalorder %v2671_v3, 1  ;;  %vm3677_vm2 = vcmp.lt.s32.totalorder %v2671_v3, 7 }
  0x42   : > { %621 = vmatpush.msra.mxu0 %v606_v6  ;;  %2066 = vmatpush.msra.mxu2 %v606_v6  ;;  %v585_v20 = vld [vmem:[#allocation5 + $0x78] sm:$0xff]  ;;  %v586_v21 = vld [vmem:[#allocation5 + $0x80] sm:$0xff]  ;;  %v583_v23 = vld [vmem:[#allocation5 + $0x68] sm:$0xff]  ;;  %p2388_p4 = pnand %p2387_p1, %p2573_p3  ;;  %p2393_p9 = por %p2392_p2, %p2391_p11 }
  0x43   : > { %2082 = vmatpush.msra.mxu3 %v607_v7  ;;  %686 = vmatpush.msra.mxu1 %v607_v7  ;;  %v582_v22 = vld [vmem:[#allocation5 + $0x60] sm:$0xff]  ;;  %v579_v24 = vld [vmem:[#allocation5 + $0x48] sm:$0xff]  ;;  %v580_v25 = vld [vmem:[#allocation5 + $0x50] sm:$0xff] }
  0x44   : > { %622 = vmatpush.msra.mxu0 %v603_v8  ;;  %2067 = vmatpush.msra.mxu2 %v603_v8  ;;  %v576_v26 = vld [vmem:[#allocation5 + $0x30] sm:$0xff]  ;;  %v577_v27 = vld [vmem:[#allocation5 + $0x38] sm:$0xff]  ;;  %v574_v29 = vld [vmem:[#allocation5 + $0x20] sm:$0xff]  ;;  %p2389_p8 = pneg %p2388_p4 }
  0x45   : > { %2083 = vmatpush.msra.mxu3 %v604_v9  ;;  %687 = vmatpush.msra.mxu1 %v604_v9  ;;  %v573_v28 = vld [vmem:[#allocation5 + $0x18] sm:$0xff]  ;;  %v570_v30 = vld [vmem:[#allocation5] sm:$0xff]  ;;  %v2630_v32 = vld [vmem:[%s2612_s26 + $0x48] sm:$0xff] }
  0x46   : > { %623 = vmatpush.msra.mxu0 %v600_v10  ;;  %2068 = vmatpush.msra.mxu2 %v600_v10  ;;  %v2627_v31 = vld [vmem:[%s2612_s26] sm:$0xff]  ;;  %v617_v33 = vld [vmem:[#allocation5 + $0x178] sm:$0xff]  ;;  %v571_v34 = vld [vmem:[#allocation5 + $0x8] sm:$0xff]  ;;  %p2394_p10 = pnand %p2393_p9, %p2389_p8 }
  0x47   : > { %2084 = vmatpush.msra.mxu3 %v601_v11  ;;  %688 = vmatpush.msra.mxu1 %v601_v11  ;;  %v614_v35 = vld [vmem:[#allocation5 + $0x160] sm:$0xff]  ;;  %v611_v36 = vld [vmem:[#allocation5 + $0x148] sm:$0xff]  ;;  %v608_v37 = vld [vmem:[#allocation5 + $0x130] sm:$0xff] }
  0x48   : > { %624 = vmatpush.msra.mxu0 %v597_v12  ;;  %2069 = vmatpush.msra.mxu2 %v597_v12  ;;  %v2637_v38 = vld [vmem:[%s2612_s26 + $0x8] sm:$0xff]  ;;  %v2640_v39 = vld [vmem:[%s2612_s26 + $0x50] sm:$0xff]  ;;  %v605_v40 = vld [vmem:[#allocation5 + $0x118] sm:$0xff] }
  0x49   : > { %2085 = vmatpush.msra.mxu3 %v598_v13  ;;  %689 = vmatpush.msra.mxu1 %v598_v13  ;;  %v602_v41 = vld [vmem:[#allocation5 + $0x100] sm:$0xff]  ;;  %v599_v42 = vld [vmem:[#allocation5 + $0xe8] sm:$0xff]  ;;  %v596_v43 = vld [vmem:[#allocation5 + $0xd0] sm:$0xff] }
  0x4a   : > { %625 = vmatpush.msra.mxu0 %v594_v14  ;;  %2070 = vmatpush.msra.mxu2 %v594_v14  ;;  %v556_v44 = vld [vmem:[%s2612_s26 + $0x10] sm:$0xff]  ;;  %v2648_v45 = vld [vmem:[%s2612_s26 + $0x58] sm:$0xff]  ;;  %v590_v47 = vld [vmem:[#allocation5 + $0xa0] sm:$0xff] }
  0x4b   : > { %2086 = vmatpush.msra.mxu3 %v595_v15  ;;  %690 = vmatpush.msra.mxu1 %v595_v15  ;;  %v593_v46 = vld [vmem:[#allocation5 + $0xb8] sm:$0xff]  ;;  %v587_v48 = vld [vmem:[#allocation5 + $0x88] sm:$0xff]  ;;  %v584_v49 = vld [vmem:[#allocation5 + $0x70] sm:$0xff] }
  0x4c   : > { %626 = vmatpush.msra.mxu0 %v591_v16  ;;  %2071 = vmatpush.msra.mxu2 %v591_v16  ;;  %v557_v50 = vld [vmem:[%s2612_s26 + $0x18] sm:$0xff]  ;;  %v566_v51 = vld [vmem:[%s2612_s26 + $0x60] sm:$0xff]  ;;  %v575_v54 = vld [vmem:[#allocation5 + $0x28] sm:$0xff] }
  0x4d   : > { %2087 = vmatpush.msra.mxu3 %v592_v17  ;;  %691 = vmatpush.msra.mxu1 %v592_v17  ;;  %v581_v52 = vld [vmem:[#allocation5 + $0x58] sm:$0xff]  ;;  %v578_v53 = vld [vmem:[#allocation5 + $0x40] sm:$0xff]  ;;  %v572_v55 = vld [vmem:[#allocation5 + $0x10] sm:$0xff] }
  0x4e   : > { %627 = vmatpush.msra.mxu0 %v588_v18  ;;  %2072 = vmatpush.msra.mxu2 %v588_v18  ;;  %v558_v56 = vld [vmem:[%s2612_s26 + $0x20] sm:$0xff]  ;;  %v567_v57 = vld [vmem:[%s2612_s26 + $0x68] sm:$0xff]  ;;  %v568_v59 = vld [vmem:[%s2612_s26 + $0x70] sm:$0xff] }
  0x4f   : > { %2088 = vmatpush.msra.mxu3 %v589_v19  ;;  %692 = vmatpush.msra.mxu1 %v589_v19  ;;  %v559_v58 = vld [vmem:[%s2612_s26 + $0x28] sm:$0xff]  ;;  %v560_v60 = vld [vmem:[%s2612_s26 + $0x30] sm:$0xff]  ;;  %v569_v61 = vld [vmem:[%s2612_s26 + $0x78] sm:$0xff] }
  0x50   : > { %628 = vmatpush.msra.mxu0 %v585_v20  ;;  %2073 = vmatpush.msra.mxu2 %v585_v20  ;;  %v561_v62 = vld [vmem:[%s2612_s26 + $0x38] sm:$0xff]  ;;  %v562_v63 = vld [vmem:[%s2612_s26 + $0x40] sm:$0xff] }
  0x51   : > { %2089 = vmatpush.msra.mxu3 %v586_v21  ;;  %693 = vmatpush.msra.mxu1 %v586_v21  ;;  %v1125_v14 = vld [vmem:[#allocation8 + $0x78] sm:$0xff]  ;;  %v1118_v2 = vld [vmem:[#allocation8 + $0x40] sm:$0xff] }
  0x52   : > { %629 = vmatpush.msra.mxu0 %v582_v22  ;;  %2074 = vmatpush.msra.mxu2 %v582_v22 }
  0x53   : > { %2090 = vmatpush.msra.mxu3 %v583_v23  ;;  %694 = vmatpush.msra.mxu1 %v583_v23  ;;  %v334_v23 = vand.u32 15, %v2671_v3 }
  0x54   : > { %630 = vmatpush.msra.mxu0 %v579_v24  ;;  %2075 = vmatpush.msra.mxu2 %v579_v24 }
  0x55   : > { %2091 = vmatpush.msra.mxu3 %v580_v25  ;;  %695 = vmatpush.msra.mxu1 %v580_v25  ;;  %vm2703_vm1 = vcmp.ne.s32.totalorder %v334_v23, 0  ;;  %v3707_v25 = vmov 0 }
  0x56   : > { %631 = vmatpush.msra.mxu0 %v576_v26  ;;  %2076 = vmatpush.msra.mxu2 %v576_v26  ;;  %v3708_v25 = vsel %vm2703_vm1, 4294967295, %v3707_v25 }
  0x57   : > { %2092 = vmatpush.msra.mxu3 %v577_v27  ;;  %696 = vmatpush.msra.mxu1 %v577_v27  ;;  %3709 = vst [vmem:[#allocation17_spill] sm:$0xff] %v3708_v25  ;;  %v1124_v27 = vld [vmem:[#allocation8 + $0x70] sm:$0xff]  ;;  %v3740_v25 = vmov 0 }
  0x58   : > { %632 = vmatpush.msra.mxu0 %v573_v28  ;;  %2077 = vmatpush.msra.mxu2 %v573_v28  ;;  %v1123_v28 = vld [vmem:[#allocation8 + $0x68] sm:$0xff] }
  0x59   : > { %2093 = vmatpush.msra.mxu3 %v574_v29  ;;  %697 = vmatpush.msra.mxu1 %v574_v29 }
  0x5a   : > { %633 = vmatpush.msra.mxu0 %v570_v30  ;;  %2078 = vmatpush.msra.mxu2 %v570_v30 }
  0x5b   : > { %634 = vmatmul.f32.vlgmr.msra.gmra.mxu0 %v2627_v31  ;;  %661 = vmatmul.f32.vlgmr.msra.gmra.mxu2 %v2630_v32 }
  0x5c   : > { %748 = vmatpush.msrb.mxu2 %v617_v33  ;;  %2094 = vmatpush.msra.mxu3 %v571_v34 }
  0x5d   : > { %726 = vmatmul.f32.vlgmr.msra.gmra.mxu3 %v2630_v32  ;;  %698 = vmatpush.msra.mxu1 %v571_v34 }
  0x5e   : > { %749 = vmatpush.msrb.mxu2 %v614_v35  ;;  %699 = vmatmul.f32.vlgmr.msra.gmra.mxu1 %v2627_v31 }
  0x60   : > { %750 = vmatpush.msrb.mxu2 %v611_v36 }
  0x62   : > { %751 = vmatpush.msrb.mxu2 %v608_v37 }
  0x63   : > { %637 = vmatmul.f32.gmra.mxu0 %v2637_v38  ;;  %664 = vmatmul.f32.gmra.mxu2 %v2640_v39 }
  0x64   : > { %752 = vmatpush.msrb.mxu2 %v605_v40 }
  0x65   : > { %729 = vmatmul.f32.gmra.mxu3 %v2640_v39 }
  0x66   : > { %753 = vmatpush.msrb.mxu2 %v602_v41  ;;  %702 = vmatmul.f32.gmra.mxu1 %v2637_v38  ;;  %v1122_v41 = vld [vmem:[#allocation8 + $0x60] sm:$0xff] }
  0x68   : > { %754 = vmatpush.msrb.mxu2 %v599_v42  ;;  %v1121_v42 = vld [vmem:[#allocation8 + $0x58] sm:$0xff] }
  0x6a   : > { %755 = vmatpush.msrb.mxu2 %v596_v43 }
  0x6b   : > { %640 = vmatmul.f32.gmra.mxu0 %v556_v44  ;;  %667 = vmatmul.f32.gmra.mxu2 %v2648_v45 }
  0x6c   : > { %756 = vmatpush.msrb.mxu2 %v593_v46 }
  0x6d   : > { %732 = vmatmul.f32.gmra.mxu3 %v2648_v45 }
  0x6e   : > { %757 = vmatpush.msrb.mxu2 %v590_v47  ;;  %705 = vmatmul.f32.gmra.mxu1 %v556_v44 }
  0x70   : > { %758 = vmatpush.msrb.mxu2 %v587_v48 }
  0x72   : > { %759 = vmatpush.msrb.mxu2 %v584_v49 }
  0x73   : > { %643 = vmatmul.f32.gmra.mxu0 %v557_v50  ;;  %670 = vmatmul.f32.gmra.mxu2 %v566_v51 }
  0x74   : > { %760 = vmatpush.msrb.mxu2 %v581_v52  ;;  %v1119_v52 = vld [vmem:[#allocation8 + $0x48] sm:$0xff] }
  0x75   : > { %735 = vmatmul.f32.gmra.mxu3 %v566_v51 }
  0x76   : > { %761 = vmatpush.msrb.mxu2 %v578_v53  ;;  %708 = vmatmul.f32.gmra.mxu1 %v557_v50 }
  0x78   : > { %762 = vmatpush.msrb.mxu2 %v575_v54 }
  0x7a   : > { %763 = vmatpush.msrb.mxu2 %v572_v55 }
  0x7b   : > { %646 = vmatmul.f32.gmra.mxu0 %v558_v56  ;;  %673 = vmatmul.f32.gmra.mxu2 %v567_v57 }
  0x7c   : > { %1126 = vmatpush.msra.mxu2 %v1125_v14  ;;  %v1115_v14 = vld [vmem:[#allocation8 + $0x28] sm:$0xff] }
  0x7d   : > { %738 = vmatmul.f32.gmra.mxu3 %v567_v57 }
  0x7e   : > { %711 = vmatmul.f32.gmra.mxu1 %v558_v56  ;;  %1127 = vmatpush.msra.mxu2 %v1124_v27  ;;  %v316_v27 = vadd.s32 16, %v2671_v3 }
  0x80   : > { %1128 = vmatpush.msra.mxu2 %v1123_v28 }
  0x82   : > { %1129 = vmatpush.msra.mxu2 %v1122_v41 }
  0x83   : > { %649 = vmatmul.f32.gmra.mxu0 %v559_v58  ;;  %676 = vmatmul.f32.gmra.mxu2 %v568_v59 }
  0x84   : > { %1130 = vmatpush.msra.mxu2 %v1121_v42  ;;  %v326_v42 = vadd.s32 96, %v2671_v3 }
  0x85   : > { %741 = vmatmul.f32.gmra.mxu3 %v568_v59 }
  0x86   : > { %714 = vmatmul.f32.gmra.mxu1 %v559_v58 }
  0x8b   : > { %652 = vmatmul.f32.gmra.mxu0 %v560_v60  ;;  %679 = vmatmul.f32.gmra.mxu2 %v569_v61 }
  0x8d   : > { %744 = vmatmul.f32.gmra.mxu3 %v569_v61 }
  0x8e   : > { %717 = vmatmul.f32.gmra.mxu1 %v560_v60 }
  0x93   : > { %655 = vmatmul.f32.gmra.mxu0 %v561_v62  ;;  %764 = vmatmul.f32.vlgmr.msrb.gmra.mxu2 %v2627_v31 }
  0x96   : > { %720 = vmatmul.f32.gmra.mxu1 %v561_v62 }
  0x9b   : > { %658 = vmatmul.f32.gmra.mxu0 %v562_v63  ;;  %767 = vmatmul.f32.gmra.mxu2 %v2637_v38 }
  0x9e   : > { %723 = vmatmul.f32.gmra.mxu1 %v562_v63 }
  0xa3   : > { %770 = vmatmul.f32.gmra.mxu2 %v556_v44 }
  0xab   : > { %773 = vmatmul.f32.gmra.mxu2 %v557_v50 }
  0xb3   : > { %776 = vmatmul.f32.gmra.mxu2 %v558_v56 }
  0xbb   : > { %779 = vmatmul.f32.gmra.mxu2 %v559_v58 }
  0xc3   : > { %782 = vmatmul.f32.gmra.mxu2 %v560_v60 }
  0xcb   : > { %785 = vmatmul.f32.gmra.mxu2 %v561_v62 }
  0xd3   : > { %788 = vmatmul.f32.gmra.mxu2 %v562_v63 }
  0xd8   : > { %v2697_v21 = vpop.f32.mrf.mxu0 }
  0xd9   : > { %v813_v22 = vrot.slane %v2697_v21, 7  ;;  %v348_v21 = vand.u32 15, %v316_v27 }
  0xdb   : > { %791 = vmatmul.f32.gmra.mxu2 %v2630_v32  ;;  %v700_v29 = vpop.f32.mrf.mxu1  ;;  %vm2798_vm4 = vcmp.ne.s32.totalorder %v348_v21, 0 }
  0xde   : > { %v2665_v0 = vpop.f32.mrf.mxu2 }
  0xe0   : > { %v2745_v58 = vpop.f32.mrf.mxu3 }
  0xe3   : > { %794 = vmatmul.f32.gmra.mxu2 %v2640_v39  ;;  %v2721_v39 = vpop.f32.mrf.mxu0  ;;  %v703_v47 = vpop.f32.mrf.mxu1 }
  0xe6   : > { %v2668_v1 = vpop.f32.mrf.mxu2 }
  0xe7   : > { %v823_v5 = vrot.slane %v2668_v1, 7 }
  0xeb   : > { %797 = vmatmul.f32.gmra.mxu2 %v2648_v45  ;;  %v2731_v46 = vpop.f32.mrf.mxu0  ;;  %v2739_v55 = vpop.f32.mrf.mxu1 }
  0xee   : > { %v668_v4 = vpop.f32.mrf.mxu2 }
  0xef   : > { %v824_v6 = vrot.slane %v668_v4, 7  ;;  %v1117_v4 = vld [vmem:[#allocation8 + $0x38] sm:$0xff] }
  0xf1   : > { %v2679_v7 = vsel %vm3672_vm0, %v823_v5, %v824_v6 }
  0xf3   : > { %800 = vmatmul.f32.gmra.mxu2 %v566_v51  ;;  %v1120_v51 = vld [vmem:[#allocation8 + $0x50] sm:$0xff]  ;;  %v2737_v53 = vpop.f32.mrf.mxu0  ;;  %v709_v62 = vpop.f32.mrf.mxu1 }
  0xf4   : > { %1131 = vmatpush.msra.mxu2 %v1120_v51 }
  0xf6   : > { %v671_v8 = vpop.f32.mrf.mxu2  ;;  %1132 = vmatpush.msra.mxu2 %v1119_v52  ;;  %v1113_v52 = vld [vmem:[#allocation8 + $0x18] sm:$0xff] }
  0xf7   : > { %v825_v9 = vrot.slane %v671_v8, 7  ;;  %v2760_v8 = vpop.f32.mrf.mxu3 }
  0xf8   : > { %1133 = vmatpush.msra.mxu2 %v1118_v2  ;;  %v3719_v2 = vmov 0 }
  0xf9   : > { %v2683_v10 = vsel %vm3672_vm0, %v824_v6, %v825_v9 }
  0xfa   : > { %1134 = vmatpush.msra.mxu2 %v1117_v4 }
  0xfb   : > { %803 = vmatmul.f32.gmra.mxu2 %v567_v57 }
  0xfe   : > { %v674_v11 = vpop.f32.mrf.mxu2 }
  0xff   : > { %v826_v12 = vrot.slane %v674_v11, 7  ;;  %v1116_v11 = vld [vmem:[#allocation8 + $0x30] sm:$0xff] }
 0x100   : > { %1135 = vmatpush.msra.mxu2 %v1116_v11 }
 0x101   : > { %v2687_v13 = vsel %vm3672_vm0, %v825_v9, %v826_v12 }
 0x102   : > { %1136 = vmatpush.msra.mxu2 %v1115_v14  ;;  %v328_v14 = vadd.s32 112, %v2671_v3 }
 0x103   : > { %806 = vmatmul.f32.gmra.mxu2 %v568_v59  ;;  %v2747_v59 = vpop.f32.mrf.mxu0 }
 0x104   : > { %v817_v27 = vrot.slane %v2747_v59, 7 }
 0x106   : > { %v677_v15 = vpop.f32.mrf.mxu2 }
 0x107   : > { %v827_v16 = vrot.slane %v677_v15, 7  ;;  %v315_v15 = vadd.s32 8, %v2671_v3 }
 0x109   : > { %v2691_v17 = vsel %vm3672_vm0, %v826_v12, %v827_v16  ;;  %v2764_v12 = vpop.f32.mrf.mxu1 }
 0x10b   : > { %809 = vmatmul.f32.gmra.mxu2 %v569_v61  ;;  %v2762_v9 = vpop.f32.mrf.mxu0 }
 0x10c   : > { %v818_v59 = vrot.slane %v2762_v9, 7 }
 0x10e   : > { %v680_v18 = vpop.f32.mrf.mxu2 }
 0x10f   : > { %v828_v19 = vrot.slane %v680_v18, 7  ;;  %v814_v18 = vrot.slane %v2721_v39, 7 }
 0x111   : > { %v2695_v20 = vsel %vm3672_vm0, %v827_v16, %v828_v19  ;;  %v845_v26 = vsel %vm3672_vm0, %v828_v19, %v813_v22  ;;  %v733_v19 = vpop.f32.mrf.mxu3  ;;  %v844_v28 = vsel %vm3672_vm0, %v813_v22, %v814_v18  ;;  %v816_v22 = vrot.slane %v2737_v53, 7 }
 0x112   : > { %v846_v30 = vsel %vm2703_vm1, %v845_v26, 0.0  ;;  %v341_v26 = vand.u32 15, %v315_v15  ;;  %v2858_v9 = vadd.f32 %v2679_v7, %v733_v19  ;;  %vm1081_vm1 = vcmask 1042434  }
 0x113   : > { %v911_v34 = vadd.f32 %v846_v30, %v700_v29  ;;  %v2770_v23 = vpop.f32.mrf.mxu0  ;;  %v2777_v29 = vpop.f32.mrf.mxu1  ;;  %v324_v30 = vadd.s32 80, %v2671_v3 }
 0x114   : > { %vm2780_vm3 = vcmp.ne.s32.totalorder %v341_v26, 15 }
 0x115   : > { %v404_v41 = vand.u32 15, %v324_v30 }
 0x116   : > { %v2701_v24 = vpop.f32.mrf.mxu2 }
 0x117   : > { %v3668_v32 = vrot.slane %v2701_v24, 1  ;;  %vm2807_vm5 = vcmp.ne.s32.totalorder %v404_v41, 0 }
 0x11b   : > { %v2826_v26 = vpop.f32.mrf.mxu1 }
 0x11e   : > { %v768_v31 = vpop.f32.mrf.mxu2 }
 0x11f   : > { %v863_v33 = vrot.slane %v768_v31, 1  ;;  %v3710_v31 = vmov 0 }
 0x120   : > { %v3711_v31 = vsel %vm2780_vm3, 4294967295, %v3710_v31 }
 0x121   : > { %v893_v35 = vsel %vm3677_vm2, %v3668_v32, %v863_v33  ;;  %3712 = vst [vmem:[#allocation18_spill] sm:$0xff] %v3711_v31 }
 0x122   : > { %v2719_v36 = vadd.f32 %v911_v34, %v893_v35  ;;  %v1114_v35 = vld [vmem:[#allocation8 + $0x20] sm:$0xff] }
 0x123   : > { %1137 = vmatpush.msra.mxu2 %v1114_v35 }
 0x125   : > { %1138 = vmatpush.msra.mxu2 %v1113_v52  ;;  %v1112_v52 = vld [vmem:[#allocation8 + $0x10] sm:$0xff] }
 0x126   : > { %v771_v37 = vpop.f32.mrf.mxu2 }
 0x127   : > { %v864_v38 = vrot.slane %v771_v37, 1  ;;  %v815_v37 = vrot.slane %v2731_v46, 7  ;;  %v3713_v46 = vmov 0  ;;  %1139 = vmatpush.msra.mxu2 %v1112_v52 }
 0x128   : > { %v3714_v46 = vsel %vm2798_vm4, 4294967295, %v3713_v46 }
 0x129   : > { %v2725_v40 = vsel %vm3677_vm2, %v863_v33, %v864_v38  ;;  %v317_v33 = vadd.s32 24, %v2671_v3  ;;  %3715 = vst [vmem:[#allocation19_spill] sm:$0xff] %v3714_v46  ;;  %v842_v53 = vsel %vm3672_vm0, %v815_v37, %v816_v22 }
 0x12a   : > { %v896_v39 = vsel %vm2780_vm3, %v2725_v40, 0.0  ;;  %v3670_v40 = vrot.slane %v2665_v0, 7  ;;  %v914_v30 = vadd.f32 %v842_v53, %v709_v62  ;;  %v3725_v62 = vmov 0 }
 0x12b   : > { %v819_v53 = vrot.slane %v2770_v23, 7  ;;  %v322_v23 = vadd.s32 64, %v2671_v3 }
 0x12c   : > { %v835_v11 = vsel %vm3672_vm0, %v3670_v40, %v823_v5 }
 0x12d   : > { %v856_v5 = vsel %vm2807_vm5, %v835_v11, 0.0  ;;  %v840_v11 = vsel %vm3672_vm0, %v817_v27, %v818_v59 }
 0x12e   : > { %v774_v43 = vpop.f32.mrf.mxu2 }
 0x12f   : > { %v865_v44 = vrot.slane %v774_v43, 1  ;;  %v355_v43 = vand.u32 15, %v317_v33  ;;  %v3722_v33 = vmov 0 }
 0x131   : > { %v2729_v45 = vsel %vm3677_vm2, %v864_v38, %v865_v44  ;;  %v912_v38 = vadd.f32 %v844_v28, %v703_v47  ;;  %v843_v47 = vsel %vm3672_vm0, %v814_v18, %v815_v37  ;;  %vm2811_vm6 = vcmp.ne.s32.totalorder %v355_v43, 15 }
 0x132   : > { %v3720_v2 = vsel %vm2811_vm6, 4294967295, %v3719_v2  ;;  %v848_v15 = vsel %vm2798_vm4, %v843_v47, 0.0  ;;  %v319_v37 = vadd.s32 40, %v2671_v3  ;;  %v321_v47 = vadd.s32 56, %v2671_v3 }
 0x133   : > { %v2796_v51 = vadd.f32 %v912_v38, %v896_v39  ;;  %3721 = vst [vmem:[#allocation21_spill] sm:$0xff] %v3720_v2  ;;  %v913_v35 = vadd.f32 %v848_v15, %v2739_v55  ;;  %v432_v38 = vand.u32 15, %v328_v14  ;;  %v841_v55 = vsel %vm3672_vm0, %v816_v22, %v817_v27 }
 0x134   : > { %v999_v22 = vmul.f32 %v2719_v36, %v2719_v36  ;;  %v369_v7 = vand.u32 15, %v319_v37  ;;  %v721_v37 = vpop.f32.mrf.mxu1  ;;  %v3728_v27 = vmov 0 }
 0x135   : > { %v943_v28 = vadd.f32 %v2796_v51, %v2719_v36  ;;  %v1000_v39 = vmul.f32 %v2796_v51, %v2796_v51  ;;  %vm2892_vm10 = vcmp.ne.s32.totalorder %v432_v38, 0  ;;  %v1111_v38 = vld [vmem:[#allocation8 + $0x8] sm:$0xff] }
 0x136   : > { %v777_v48 = vpop.f32.mrf.mxu2  ;;  %vm2886_vm9 = vcmp.ne.s32.totalorder %v369_v7, 15  ;;  %1140 = vmatpush.msra.mxu2 %v1111_v38 }
 0x137   : > { %v866_v49 = vrot.slane %v777_v48, 1  ;;  %v318_v48 = vadd.s32 32, %v2671_v3  ;;  %v944_v21 = vrot.slane %v943_v28, 4  ;;  %v3729_v27 = vsel %vm2886_vm9, 4294967295, %v3728_v27 }
 0x138   : > { %3730 = vst [vmem:[#allocation24_spill] sm:$0xff] %v3729_v27 }
 0x139   : > { %v2735_v50 = vsel %vm3677_vm2, %v865_v44, %v866_v49  ;;  %v736_v44 = vpop.f32.mrf.mxu3  ;;  %v362_v18 = vand.u32 15, %v318_v48 }
 0x13a   : > { %v898_v1 = vsel %vm2811_vm6, %v2735_v50, 0.0  ;;  %v320_v50 = vadd.s32 48, %v2671_v3 }
 0x13b   : > { %vm2843_vm8 = vcmp.ne.s32.totalorder %v362_v18, 0  ;;  %v2850_v41 = vadd.f32 %v914_v30, %v898_v1  ;;  %v945_v18 = vadd.f32 %v944_v21, %v943_v28  ;;  %v1015_v30 = vadd.f32 %v1000_v39, %v999_v22  ;;  %v1110_v22 = vld [vmem:[#allocation8] sm:$0xff] }
 0x13c   : > { %v3726_v62 = vsel %vm2843_vm8, 4294967295, %v3725_v62  ;;  %v376_v14 = vand.u32 15, %v320_v50  ;;  %v325_v28 = vadd.s32 88, %v2671_v3  ;;  %v3731_v50 = vmov 0  ;;  %1141 = vmatpush.msra.mxu2 %v1110_v22 }
 0x13d   : > { %3727 = vst [vmem:[#allocation23_spill] sm:$0xff] %v3726_v62  ;;  %v3732_v50 = vsel %vm2892_vm10, 4294967295, %v3731_v50  ;;  %v3734_v21 = vmov 0  ;;  %v390_v39 = vand.u32 15, %v322_v23 }
 0x13e   : > { %v780_v54 = vpop.f32.mrf.mxu2  ;;  %3733 = vst [vmem:[#allocation25_spill] sm:$0xff] %v3732_v50  ;;  %vm2898_vm11 = vcmp.ne.s32.totalorder %v376_v14, 0  ;;  %v411_v32 = vand.u32 15, %v325_v28 }
 0x13f   : > { %v867_v56 = vrot.slane %v780_v54, 1  ;;  %v3716_v54 = vmov 0  ;;  %v3735_v21 = vsel %vm2898_vm11, 4294967295, %v3734_v21  ;;  %vm2920_vm13 = vcmp.ne.s32.totalorder %v390_v39, 0 }
 0x140   : > { %v3717_v54 = vsel %vm2807_vm5, 4294967295, %v3716_v54  ;;  %3736 = vst [vmem:[#allocation26_spill] sm:$0xff] %v3735_v21  ;;  %v3741_v25 = vsel %vm2920_vm13, 4294967295, %v3740_v25  ;;  %vm2945_vm15 = vcmp.ne.s32.totalorder %v411_v32, 15  ;;  %vm3765_vm5 = vcmask 1046534  }
 0x141   : > { %v2743_v57 = vsel %vm3677_vm2, %v866_v49, %v867_v56  ;;  %v2794_v49 = vpop.f32.mrf.mxu0  ;;  %3718 = vst [vmem:[#allocation20_spill] sm:$0xff] %v3717_v54  ;;  %v2863_v48 = vpop.f32.mrf.mxu3 }
 0x142   : > { %v820_v1 = vrot.slane %v2794_v49, 7  ;;  %v1002_v49 = vmul.f32 %v2850_v41, %v2850_v41  ;;  %3742 = vst [vmem:[#allocation28_spill] sm:$0xff] %v3741_v25 }
 0x146   : > { %v2749_v60 = vpop.f32.mrf.mxu2 }
 0x147   : > { %v3669_v61 = vrot.slane %v2749_v60, 1 }
 0x149   : > { %v2756_v63 = vsel %vm3677_vm2, %v867_v56, %v3669_v61  ;;  %v418_v56 = vand.u32 15, %v326_v42  ;;  %v2855_v42 = vadd.f32 %v856_v5, %v2760_v8  ;;  %v2870_v8 = vadd.f32 %v913_v35, %v2729_v45 }
 0x14a   : > { %v383_v35 = vand.u32 15, %v321_v47  ;;  %v1016_v47 = vrot.slane %v1015_v30, 4 }
 0x14b   : > { %vm2836_vm7 = vcmp.ne.s32.totalorder %v418_v56, 0  ;;  %v659_v56 = vpop.f32.mrf.mxu0  ;;  %v950_v45 = vadd.f32 %v2850_v41, %v2870_v8  ;;  %v1001_v7 = vmul.f32 %v2870_v8, %v2870_v8 }
 0x14c   : > { %v3723_v33 = vsel %vm2836_vm7, 4294967295, %v3722_v33  ;;  %v858_v43 = vsel %vm2836_vm7, %v2683_v10, 0.0  ;;  %v850_v10 = vsel %vm2843_vm8, %v841_v55, 0.0  ;;  %v821_v5 = vrot.slane %v659_v56, 7 }
 0x14d   : > { %3724 = vst [vmem:[#allocation22_spill] sm:$0xff] %v3723_v33  ;;  %v2879_v15 = vadd.f32 %v858_v43, %v736_v44  ;;  %v323_v55 = vadd.s32 72, %v2671_v3  ;;  %v915_v52 = vadd.f32 %v850_v10, %v2764_v12  ;;  %v916_v44 = vadd.f32 %v840_v11, %v2777_v29  ;;  %v1498_v33 = vld [vmem:[#allocation7 + $0x160] sm:$0xff] }
 0x14e   : > { %v2758_v6 = vpop.f32.mrf.mxu2  ;;  %v839_v12 = vsel %vm3672_vm0, %v818_v59, %v819_v53  ;;  %v946_v43 = vrot.slane %v945_v18, 2  ;;  %v951_v29 = vrot.slane %v950_v45, 4  ;;  %vm2907_vm12 = vcmp.ne.s32.totalorder %v383_v35, 15  ;;  %v742_v35 = vpop.f32.mrf.mxu3 }
 0x14f   : > { %v3737_v10 = vmov 0  ;;  %v838_v11 = vsel %vm3672_vm0, %v819_v53, %v820_v1  ;;  %v397_v14 = vand.u32 15, %v323_v55  ;;  %v900_v59 = vsel %vm2886_vm9, %v2756_v63, 0.0 }
 0x150   : > { %v3738_v10 = vsel %vm2907_vm12, 4294967295, %v3737_v10  ;;  %v1022_v40 = vadd.f32 %v1002_v49, %v1001_v7  ;;  %v837_v53 = vsel %vm3672_vm0, %v820_v1, %v821_v5  ;;  %v952_v63 = vadd.f32 %v951_v29, %v950_v45 }
 0x151   : > { %3739 = vst [vmem:[#allocation27_spill] sm:$0xff] %v3738_v10  ;;  %v3743_v49 = vrot.slane %v2665_v0, 7  ;;  %v2935_v38 = vadd.f32 %v916_v44, %v900_v59  ;;  %v852_v1 = vsel %vm2898_vm11, %v839_v12, 0.0  ;;  %v918_v7 = vadd.f32 %v838_v11, %v721_v37  ;;  %v724_v12 = vpop.f32.mrf.mxu1 }
 0x152   : > { %vm2939_vm14 = vcmp.ne.s32.totalorder %v397_v14, 15  ;;  %v3744_v45 = vmov 0  ;;  %v2954_v44 = vadd.f32 %v915_v52, %v2743_v57  ;;  %v854_v29 = vsel %vm2920_vm13, %v837_v53, 0.0 }
 0x153   : > { %v836_v39 = vsel %vm3672_vm0, %v821_v5, %v3743_v49  ;;  %v3745_v45 = vsel %vm2939_vm14, 4294967295, %v3744_v45  ;;  %v1017_v5 = vadd.f32 %v1016_v47, %v1015_v30  ;;  %v947_v32 = vadd.f32 %v946_v43, %v945_v18 }
 0x154   : > { %3746 = vst [vmem:[#allocation29_spill] sm:$0xff] %v3745_v45  ;;  %v953_v22 = vrot.slane %v952_v63, 2  ;;  %v1023_v11 = vrot.slane %v1022_v40, 4  ;;  %v917_v14 = vadd.f32 %v852_v1, %v2826_v26  ;;  %v957_v59 = vadd.f32 %v2935_v38, %v2954_v44 }
 0x155   : > { %v3750_v30 = vrot.slane %v2749_v60, 1  ;;  %v860_v18 = vsel %vm2892_vm10, %v2691_v17, 0.0  ;;  %v920_v26 = vadd.f32 %v836_v39, %v2745_v58  ;;  %v919_v53 = vadd.f32 %v854_v29, %v724_v12 }
 0x156   : > { %v2767_v16 = vpop.f32.mrf.mxu2  ;;  %v1018_v60 = vrot.slane %v1017_v5, 2  ;;  %v327_v1 = vadd.s32 104, %v2671_v3  ;;  %v745_v58 = vpop.f32.mrf.mxu3  ;;  %v954_v39 = vadd.f32 %v953_v22, %v952_v63  ;;  %v3000_v29 = vadd.f32 %v860_v18, %v742_v35 }
 0x157   : > { %v870_v56 = vrot.slane %v2767_v16, 1  ;;  %v869_v16 = vrot.slane %v2758_v6, 1  ;;  %v3005_v22 = vadd.f32 %v2695_v20, %v745_v58  ;;  %vm3757_vm10 = vcmp.lt.s32.totalorder %v2671_v3, 7 }
 0x158   : > { %v425_v63 = vand.u32 15, %v327_v1  ;;  %v3758_v45 = vrot.slane %v2701_v24, 1  ;;  %vm3689_vm7 = vcmask 1046534  }
 0x159   : > { %v886_v6 = vsel %vm3677_vm2, %v869_v16, %v870_v56  ;;  %v887_v57 = vsel %vm3677_vm2, %v3750_v30, %v869_v16 }
 0x15a   : > { %v902_v37 = vsel %vm2907_vm12, %v886_v6, 0.0  ;;  %vm3023_vm0 = vcmp.ne.s32.totalorder %v425_v63, 15 }
 0x15b   : > { %v2975_v43 = vadd.f32 %v918_v7, %v902_v37  ;;  %v1024_v7 = vadd.f32 %v1023_v11, %v1022_v40  ;;  %v958_v37 = vrot.slane %v957_v59, 4  ;;  %v1003_v40 = vmul.f32 %v2954_v44, %v2954_v44 }
 0x15c   : > { %v3007_v11 = vadd.f32 %v1018_v60, %v1017_v5 }
 0x15d   : > { %v1006_v35 = vmul.f32 %v2975_v43, %v2975_v43 }
 0x15e   : > { %v2785_v34 = vpop.f32.mrf.mxu2 }
 0x166   : > { %v2815_v4 = vpop.f32.mrf.mxu2 }
 0x167   : > { %v872_v23 = vrot.slane %v2815_v4, 1  ;;  %v871_v4 = vrot.slane %v2785_v34, 1 }
 0x169   : > { %v884_v34 = vsel %vm3677_vm2, %v871_v4, %v872_v23  ;;  %v885_v16 = vsel %vm3677_vm2, %v870_v56, %v871_v4  ;;  %v1004_v56 = vmul.f32 %v2935_v38, %v2935_v38 }
 0x16a   : > { %v904_v52 = vsel %vm2939_vm14, %v884_v34, 0.0  ;;  %v948_v34 = vrot.slane %v947_v32, 1  ;;  %v2993_v4 = vadd.f32 %v919_v53, %v885_v16 }
 0x16b   : > { %v2984_v30 = vadd.f32 %v920_v26, %v904_v52  ;;  %v955_v52 = vrot.slane %v954_v39, 1 }
 0x16e   : > { %v2872_v19 = vpop.f32.mrf.mxu2 }
 0x16f   : > { %v873_v28 = vrot.slane %v2872_v19, 1  ;;  %v3747_v19 = vmov 0 }
 0x170   : > { %v3748_v19 = vsel %vm2945_vm15, 4294967295, %v3747_v19 }
 0x171   : > { %3749 = vst [vmem:[#allocation30_spill] sm:$0xff] %v3748_v19  ;;  %v883_v49 = vsel %vm3677_vm2, %v872_v23, %v873_v28 }
 0x176   : > { %v2918_v61 = vpop.f32.mrf.mxu2 }
 0x177   : > { %v874_v55 = vrot.slane %v2918_v61, 1 }
 0x179   : > { %v882_v0 = vsel %vm3677_vm2, %v873_v28, %v874_v55  ;;  %v2996_v28 = vadd.f32 %v2855_v42, %v883_v49 }
 0x17a   : > { %v906_v47 = vsel %vm2945_vm15, %v882_v0, 0.0  ;;  %v2982_v0 = vadd.f32 %v917_v14, %v887_v57  ;;  %v971_v14 = vadd.f32 %v2984_v30, %v2993_v4  ;;  %v3013_v57 = vadd.f32 %v948_v34, %v947_v32 }
 0x17b   : > { %v2987_v17 = vadd.f32 %v2858_v9, %v906_v47  ;;  %v924_v9 = vadd.f32 %v2687_v13, %v2863_v48  ;;  %v1025_v13 = vrot.slane %v1024_v7, 2  ;;  %v1029_v48 = vadd.f32 %v1004_v56, %v1003_v40 }
 0x17c   : > { %v964_v23 = vadd.f32 %v2975_v43, %v2982_v0  ;;  %v959_v47 = vadd.f32 %v958_v37, %v957_v59  ;;  %v1005_v26 = vmul.f32 %v2982_v0, %v2982_v0  ;;  %v3751_v32 = vmov 0 }
 0x17d   : > { %v978_v42 = vadd.f32 %v2987_v17, %v2996_v28  ;;  %v3752_v32 = vsel %vm3023_vm0, 4294967295, %v3751_v32  ;;  %v972_v60 = vrot.slane %v971_v14, 4  ;;  %v1008_v59 = vmul.f32 %v2984_v30, %v2984_v30 }
 0x17e   : > { %v804_v6 = vpop.f32.mrf.mxu2  ;;  %v965_v18 = vrot.slane %v964_v23, 4  ;;  %3753 = vst [vmem:[#allocation31_spill] sm:$0xff] %v3752_v32  ;;  %v1010_v61 = vmul.f32 %v2987_v17, %v2987_v17  ;;  %v1036_v49 = vadd.f32 %v1006_v35, %v1005_v26  ;;  %v1007_v37 = vmul.f32 %v2993_v4, %v2993_v4  ;;  %v1491_v32 = vld [vmem:[#allocation7 + $0x128] sm:$0xff] }
 0x17f   : > { %v875_v12 = vrot.slane %v804_v6, 1  ;;  %v329_v6 = vadd.s32 120, %v2671_v3  ;;  %v979_v16 = vrot.slane %v978_v42, 4  ;;  %v1009_v56 = vmul.f32 %v2996_v28, %v2996_v28 }
 0x180   : > { %v966_v58 = vadd.f32 %v965_v18, %v964_v23  ;;  %v3043_v63 = vadd.f32 %v1025_v13, %v1024_v7  ;;  %v1043_v26 = vadd.f32 %v1008_v59, %v1007_v37  ;;  %v1501_v23 = vld [vmem:[#allocation7 + $0x178] sm:$0xff]  ;;  %v1500_v18 = vld [vmem:[#allocation7 + $0x170] sm:$0xff]  ;;  %v1499_v13 = vld [vmem:[#allocation7 + $0x168] sm:$0xff]  ;;  %v1037_v59 = vrot.slane %v1036_v49, 4 }
 0x181   : > { %v881_v20 = vsel %vm3677_vm2, %v874_v55, %v875_v12  ;;  %v1030_v55 = vrot.slane %v1029_v48, 4  ;;  %v980_v50 = vadd.f32 %v979_v16, %v978_v42  ;;  %1632 = vmatpush.msrb.mxu1 %v1501_v23  ;;  %1567 = vmatpush.msrb.mxu0 %v1500_v18  ;;  %v3054_v42 = vadd.f32 %v955_v52, %v954_v39  ;;  %v1496_v37 = vld [vmem:[#allocation7 + $0x150] sm:$0xff]  ;;  %v1493_v39 = vld [vmem:[#allocation7 + $0x138] sm:$0xff] }
 0x182   : > { %v3033_v1 = vadd.f32 %v2879_v15, %v881_v20  ;;  %v439_v15 = vand.u32 15, %v329_v6  ;;  %v973_v20 = vadd.f32 %v972_v60, %v971_v14  ;;  %v1497_v14 = vld [vmem:[#allocation7 + $0x158] sm:$0xff]  ;;  %v967_v60 = vrot.slane %v966_v58, 2  ;;  %1502 = vmatpush.msrb.mxu3 %v1499_v13  ;;  %v1492_v13 = vld [vmem:[#allocation7 + $0x130] sm:$0xff] }
 0x183   : > { %v1031_v6 = vadd.f32 %v1030_v55, %v1029_v48  ;;  %1633 = vmatpush.msrb.mxu1 %v1498_v33  ;;  %1568 = vmatpush.msrb.mxu0 %v1497_v14  ;;  %v1044_v55 = vrot.slane %v1043_v26, 4  ;;  %v981_v25 = vrot.slane %v980_v50, 2  ;;  %v1038_v33 = vadd.f32 %v1037_v59, %v1036_v49 }
 0x184   : > { %v1011_v54 = vmul.f32 %v3033_v1, %v3033_v1  ;;  %v974_v48 = vrot.slane %v973_v20, 2  ;;  %1503 = vmatpush.msrb.mxu3 %v1496_v37  ;;  %v968_v14 = vadd.f32 %v967_v60, %v966_v58  ;;  %vm1091_vm15 = vcmask 1047559  }
 0x185   : > { %v1045_v59 = vadd.f32 %v1044_v55, %v1043_v26  ;;  %v1039_v60 = vrot.slane %v1038_v33, 2 }
 0x186   : > { %v807_v5 = vpop.f32.mrf.mxu2  ;;  %1504 = vmatpush.msrb.mxu3 %v1493_v39  ;;  %v969_v39 = vrot.slane %v968_v14, 1 }
 0x187   : > { %v876_v53 = vrot.slane %v807_v5, 1  ;;  %v960_v5 = vrot.slane %v959_v47, 2 }
 0x189   : > { %v880_v34 = vsel %vm3677_vm2, %v875_v12, %v876_v53  ;;  %v1050_v12 = vadd.f32 %v1010_v61, %v1009_v56  ;;  %v1495_v61 = vld [vmem:[#allocation7 + $0x148] sm:$0xff]  ;;  %vm3056_vm2 = vcmp.ne.s32.totalorder %v439_v15, 15  ;;  %v3754_v56 = vmov 0 }
 0x18a   : > { %v908_v40 = vsel %vm3023_vm0, %v880_v34, 0.0  ;;  %v1494_v34 = vld [vmem:[#allocation7 + $0x140] sm:$0xff]  ;;  %v3755_v56 = vsel %vm3056_vm2, 4294967295, %v3754_v56  ;;  %v961_v52 = vadd.f32 %v960_v5, %v959_v47  ;;  %vm3759_vm0 = vmmov %vm3757_vm10  ;;  %1634 = vmatpush.msrb.mxu1 %v1495_v61  ;;  %v982_v61 = vadd.f32 %v981_v25, %v980_v50 }
 0x18b   : > { %v3045_v35 = vadd.f32 %v924_v9, %v908_v40  ;;  %3756 = vst [vmem:[#allocation32_spill] sm:$0xff] %v3755_v56  ;;  %v1051_v18 = vrot.slane %v1050_v12, 4  ;;  %1569 = vmatpush.msrb.mxu0 %v1494_v34  ;;  %v1046_v25 = vrot.slane %v1045_v59, 2 }
 0x18c   : > { %1635 = vmatpush.msrb.mxu1 %v1492_v13  ;;  %v983_v50 = vrot.slane %v982_v61, 1 }
 0x18d   : > { %v985_v7 = vadd.f32 %v3045_v35, %v3033_v1  ;;  %v1012_v9 = vmul.f32 %v3045_v35, %v3045_v35  ;;  %1570 = vmatpush.msrb.mxu0 %v1491_v32  ;;  %v1052_v58 = vadd.f32 %v1051_v18, %v1050_v12 }
 0x18e   : > { %v810_v16 = vpop.f32.mrf.mxu2 }
 0x18f   : > { %v877_v40 = vrot.slane %v810_v16, 1  ;;  %v986_v19 = vrot.slane %v985_v7, 4  ;;  %v1057_v23 = vadd.f32 %v1012_v9, %v1011_v54 }
 0x191   : > { %v879_v15 = vsel %vm3757_vm10, %v876_v53, %v877_v40  ;;  %v894_v16 = vsel %vm3759_vm0, %v877_v40, %v3758_v45  ;;  %v987_v54 = vadd.f32 %v986_v19, %v985_v7  ;;  %v1058_v9 = vrot.slane %v1057_v23, 4 }
 0x192   : > { %v910_v47 = vsel %vm3056_vm2, %v894_v16, 0.0  ;;  %v3069_v5 = vadd.f32 %v3000_v29, %v879_v15  ;;  %v1032_v53 = vrot.slane %v1031_v6, 2  ;;  %v962_v19 = vrot.slane %v961_v52, 1 }
 0x193   : > { %v3072_v24 = vadd.f32 %v3005_v22, %v910_v47  ;;  %v988_v45 = vrot.slane %v987_v54, 2  ;;  %v975_v7 = vadd.f32 %v974_v48, %v973_v20  ;;  %v1027_v22 = vrot.slane %v3043_v63, 1 }
 0x194   : > { %v1013_v49 = vmul.f32 %v3069_v5, %v3069_v5  ;;  %v1059_v40 = vadd.f32 %v1058_v9, %v1057_v23  ;;  %v1033_v32 = vadd.f32 %v1032_v53, %v1031_v6  ;;  %v963_v16 = vadd.f32 %v962_v19, %v961_v52 }
 0x195   : > { %v992_v29 = vadd.f32 %v3072_v24, %v3069_v5  ;;  %v1014_v34 = vmul.f32 %v3072_v24, %v3072_v24  ;;  %v989_v37 = vadd.f32 %v988_v45, %v987_v54  ;;  %v976_v20 = vrot.slane %v975_v7, 1 }
 0x196   : > { %v1053_v48 = vrot.slane %v1052_v58, 2  ;;  %v1040_v47 = vadd.f32 %v1039_v60, %v1038_v33  ;;  %vm3760_vm10 = vcmask 1041409   ;;  %v1060_v18 = vrot.slane %v1059_v40, 2 }
 0x197   : > { %v993_v13 = vrot.slane %v992_v29, 4  ;;  %v1064_v15 = vadd.f32 %v1014_v34, %v1013_v49  ;;  %v990_v56 = vrot.slane %v989_v37, 1  ;;  %v1080_v12 = vsel %vm3760_vm10, %v3054_v42, %v3013_v57 }
 0x198   : > { %v1034_v23 = vrot.slane %v1033_v32, 1  ;;  %v970_v6 = vadd.f32 %v969_v39, %v968_v14  ;;  %v977_v53 = vadd.f32 %v976_v20, %v975_v7  ;;  %v1082_v52 = vsel %vm1081_vm1, %v963_v16, %v1080_v12 }
 0x199   : > { %v994_v26 = vadd.f32 %v993_v13, %v992_v29  ;;  %v1065_v55 = vrot.slane %v1064_v15, 4  ;;  %vm1085_vm0 = vcmask 1044484   ;;  %v1047_v45 = vadd.f32 %v1046_v25, %v1045_v59 }
 0x19a   : > { %v984_v19 = vadd.f32 %v983_v50, %v982_v61  ;;  %v1054_v29 = vadd.f32 %v1053_v48, %v1052_v58  ;;  %v991_v33 = vadd.f32 %v990_v56, %v989_v37  ;;  %vm1087_vm2 = vcmask 1045509  }
 0x19b   : > { %v995_v54 = vrot.slane %v994_v26, 2  ;;  %v1066_v9 = vadd.f32 %v1065_v55, %v1064_v15  ;;  %v1041_v60 = vrot.slane %v1040_v47, 1  ;;  %v1061_v13 = vadd.f32 %v1060_v18, %v1059_v40 }
 0x19c   : > { %vm3761_vm10 = vcmask 1043459   ;;  %v1048_v7 = vrot.slane %v1047_v45, 1  ;;  %v1028_v39 = vadd.f32 %v1027_v22, %v3043_v63  ;;  %v1055_v58 = vrot.slane %v1054_v29, 1 }
 0x19d   : > { %v996_v49 = vadd.f32 %v995_v54, %v994_v26  ;;  %v1067_v34 = vrot.slane %v1066_v9, 2  ;;  %v1084_v57 = vsel %vm3761_vm10, %v970_v6, %v1082_v52  ;;  %v1035_v37 = vadd.f32 %v1034_v23, %v1033_v32  ;;  %v1489_v23 = vld [vmem:[#allocation7 + $0x118] sm:$0xff]  ;;  %v1490_v6 = vld [vmem:[#allocation7 + $0x120] sm:$0xff]  ;;  %v1488_v54 = vld [vmem:[#allocation7 + $0x110] sm:$0xff] }
 0x19e   : > { %v1086_v14 = vsel %vm1085_vm0, %v977_v53, %v1084_v57  ;;  %v1062_v15 = vrot.slane %v1061_v13, 1  ;;  %v3762_v40 = vrot.slane %v3007_v11, 1  ;;  %v1042_v25 = vadd.f32 %v1041_v60, %v1040_v47  ;;  %1636 = vmatpush.msrb.mxu1 %v1489_v23  ;;  %1505 = vmatpush.msrb.mxu3 %v1490_v6  ;;  %v1486_v53 = vld [vmem:[#allocation7 + $0x100] sm:$0xff]  ;;  %v1485_v52 = vld [vmem:[#allocation7 + $0xf8] sm:$0xff]  ;;  %v1479_v60 = vld [vmem:[#allocation7 + $0xc8] sm:$0xff] }
 0x19f   : > { %v997_v10 = vrot.slane %v996_v49, 1  ;;  %v1068_v42 = vadd.f32 %v1067_v34, %v1066_v9  ;;  %v1088_v61 = vsel %vm1087_vm2, %v984_v19, %v1086_v14  ;;  %v1049_v26 = vadd.f32 %v1048_v7, %v1047_v45  ;;  %v1487_v9 = vld [vmem:[#allocation7 + $0x108] sm:$0xff]  ;;  %1571 = vmatpush.msrb.mxu0 %v1488_v54  ;;  %v1484_v45 = vld [vmem:[#allocation7 + $0xf0] sm:$0xff]  ;;  %v1474_v14 = vld [vmem:[#allocation7 + $0xa0] sm:$0xff] }
 0x1a0   : > { %v1090_v56 = vsel %vm3689_vm7, %v991_v33, %v1088_v61  ;;  %v1021_v16 = vadd.f32 %v3762_v40, %v3007_v11  ;;  %v1056_v48 = vadd.f32 %v1055_v58, %v1054_v29  ;;  %vm3763_vm10 = vcmask 1041409   ;;  %1506 = vmatpush.msrb.mxu3 %v1487_v9  ;;  %1637 = vmatpush.msrb.mxu1 %v1486_v53  ;;  %v1483_v19 = vld [vmem:[#allocation7 + $0xe8] sm:$0xff]  ;;  %v1482_v29 = vld [vmem:[#allocation7 + $0xe0] sm:$0xff]  ;;  %v1480_v34 = vld [vmem:[#allocation7 + $0xd0] sm:$0xff] }
 0x1a1   : > { %v998_v59 = vadd.f32 %v997_v10, %v996_v49  ;;  %v1069_v50 = vrot.slane %v1068_v42, 1  ;;  %v1063_v63 = vadd.f32 %v1062_v15, %v1061_v13  ;;  %vm3764_vm7 = vcmask 1043459   ;;  %1572 = vmatpush.msrb.mxu0 %v1485_v52  ;;  %v1481_v49 = vld [vmem:[#allocation7 + $0xd8] sm:$0xff]  ;;  %v1478_v33 = vld [vmem:[#allocation7 + $0xc0] sm:$0xff]  ;;  %v1475_v57 = vld [vmem:[#allocation7 + $0xa8] sm:$0xff] }
 0x1a2   : > { %v1102_v10 = vsel %vm3763_vm10, %v1028_v39, %v1021_v16  ;;  %1507 = vmatpush.msrb.mxu3 %v1484_v45  ;;  %1638 = vmatpush.msrb.mxu1 %v1483_v19  ;;  %v1477_v13 = vld [vmem:[#allocation7 + $0xb8] sm:$0xff]  ;;  %v1472_v7 = vld [vmem:[#allocation7 + $0x90] sm:$0xff]  ;;  %v1470_v58 = vld [vmem:[#allocation7 + $0x80] sm:$0xff] }
 0x1a3   : > { %v1092_v20 = vsel %vm1091_vm15, %v998_v59, %v1090_v56  ;;  %v1103_v22 = vsel %vm1081_vm1, %v1035_v37, %v1102_v10  ;;  %v1070_v55 = vadd.f32 %v1069_v50, %v1068_v42  ;;  %1573 = vmatpush.msrb.mxu0 %v1482_v29  ;;  %v1476_v42 = vld [vmem:[#allocation7 + $0xb0] sm:$0xff]  ;;  %v1473_v39 = vld [vmem:[#allocation7 + $0x98] sm:$0xff]  ;;  %v1471_v59 = vld [vmem:[#allocation7 + $0x88] sm:$0xff] }
 0x1a4   : > { %1142 = vmatmul.f32.vlgmr.msra.gmra.mxu2 %v1092_v20  ;;  %v1104_v32 = vsel %vm3764_vm7, %v1042_v25, %v1103_v22  ;;  %1508 = vmatpush.msrb.mxu3 %v1481_v49  ;;  %v1469_v61 = vld [vmem:[#allocation7 + $0x78] sm:$0xff]  ;;  %v1468_v37 = vld [vmem:[#allocation7 + $0x70] sm:$0xff]  ;;  %v1466_v15 = vld [vmem:[#allocation7 + $0x60] sm:$0xff] }
 0x1a5   : > { %v1105_v12 = vsel %vm1085_vm0, %v1049_v26, %v1104_v32  ;;  %1639 = vmatpush.msrb.mxu1 %v1480_v34  ;;  %1574 = vmatpush.msrb.mxu0 %v1479_v60  ;;  %v1467_v40 = vld [vmem:[#allocation7 + $0x68] sm:$0xff]  ;;  %v1465_v16 = vld [vmem:[#allocation7 + $0x58] sm:$0xff]  ;;  %v1464_v25 = vld [vmem:[#allocation7 + $0x50] sm:$0xff] }
 0x1a6   : > { %v1106_v18 = vsel %vm1087_vm2, %v1056_v48, %v1105_v12  ;;  %1509 = vmatpush.msrb.mxu3 %v1478_v33  ;;  %v1463_v20 = vld [vmem:[#allocation7 + $0x48] sm:$0xff]  ;;  %v1462_v50 = vld [vmem:[#allocation7 + $0x40] sm:$0xff]  ;;  %v1460_v10 = vld [vmem:[#allocation7 + $0x30] sm:$0xff] }
 0x1a7   : > { %v1107_v11 = vsel %vm3765_vm5, %v1063_v63, %v1106_v18  ;;  %1640 = vmatpush.msrb.mxu1 %v1477_v13  ;;  %1575 = vmatpush.msrb.mxu0 %v1476_v42  ;;  %v1461_v63 = vld [vmem:[#allocation7 + $0x38] sm:$0xff]  ;;  %v1458_v18 = vld [vmem:[#allocation7 + $0x20] sm:$0xff]  ;;  %v1456_v23 = vld [vmem:[#allocation7 + $0x10] sm:$0xff] }
 0x1a8   : > { %v1108_v47 = vsel %vm1091_vm15, %v1070_v55, %v1107_v11  ;;  %1510 = vmatpush.msrb.mxu3 %v1475_v57  ;;  %v1459_v55 = vld [vmem:[#allocation7 + $0x28] sm:$0xff]  ;;  %v1457_v12 = vld [vmem:[#allocation7 + $0x18] sm:$0xff]  ;;  %v1454_v19 = vld [vmem:[#allocation7] sm:$0xff] }
 0x1a9   : > { %1641 = vmatpush.msrb.mxu1 %v1474_v14  ;;  %1576 = vmatpush.msrb.mxu0 %v1473_v39  ;;  %v1455_v49 = vld [vmem:[#allocation7 + $0x8] sm:$0xff] }
 0x1aa   : > { %1511 = vmatpush.msrb.mxu3 %v1472_v7 }
 0x1ab   : > { %1642 = vmatpush.msrb.mxu1 %v1471_v59  ;;  %1577 = vmatpush.msrb.mxu0 %v1470_v58 }
 0x1ac   : > { %1145 = vmatmul.f32.gmra.mxu2 %v1108_v47  ;;  %1512 = vmatpush.msrb.mxu3 %v1469_v61 }
 0x1ad   : > { %1643 = vmatpush.msrb.mxu1 %v1468_v37  ;;  %1578 = vmatpush.msrb.mxu0 %v1467_v40 }
 0x1ae   : > { %1513 = vmatpush.msrb.mxu3 %v1466_v15 }
 0x1af   : > { %1644 = vmatpush.msrb.mxu1 %v1465_v16  ;;  %1579 = vmatpush.msrb.mxu0 %v1464_v25 }
 0x1b0   : > { %1514 = vmatpush.msrb.mxu3 %v1463_v20 }
 0x1b1   : > { %1645 = vmatpush.msrb.mxu1 %v1462_v50  ;;  %1580 = vmatpush.msrb.mxu0 %v1461_v63 }
 0x1b2   : > { %1515 = vmatpush.msrb.mxu3 %v1460_v10 }
 0x1b3   : > { %1646 = vmatpush.msrb.mxu1 %v1459_v55  ;;  %1581 = vmatpush.msrb.mxu0 %v1458_v18  ;;  %v3145_v18 = vld [vmem:[#allocation10] sm:$0xff] }
 0x1b4   : > { %1516 = vmatpush.msrb.mxu3 %v1457_v12 }
 0x1b5   : > { %1647 = vmatpush.msrb.mxu1 %v1456_v23  ;;  %1582 = vmatpush.msrb.mxu0 %v1455_v49 }
 0x1b6   : > { %1517 = vmatpush.msrb.mxu3 %v1454_v19 }
 0x227   : > { %v3101_v56 = vpop.f32.mrf.mxu2 }
 0x228   : > { %v3104_v26 = vrot.slane %v3101_v56, 1  ;;  %v3107_v48 = vrot.slane %v3101_v56, 2  ;;  %v3110_v22 = vrot.slane %v3101_v56, 4  ;;  %v3113_v32 = vrot.slane %v3101_v56, 5 }
 0x229   : > { %v1179_v47 = vmul.f32 %v3101_v56, %v3101_v56  ;;  %v3122_v9 = vrot.slane %v3101_v56, 6  ;;  %v3129_v14 = vrot.slane %v3101_v56, 3  ;;  %v3140_v63 = vrot.slane %v3101_v56, 7 }
 0x22a   : > { %v1180_v6 = vmul.f32 %v3104_v26, %v3104_v26  ;;  %v1181_v54 = vmul.f32 %v3107_v48, %v3107_v48  ;;  %v1183_v29 = vmul.f32 %v3110_v22, %v3110_v22  ;;  %v1184_v13 = vmul.f32 %v3113_v32, %v3113_v32 }
 0x22b   : > { %v1185_v61 = vmul.f32 %v3122_v9, %v3122_v9  ;;  %v1182_v55 = vmul.f32 %v3129_v14, %v3129_v14 }
 0x22f   : > { %v1146_v11 = vpop.f32.mrf.mxu2 }
 0x230   : > { %v1165_v53 = vrot.slane %v1146_v11, 1  ;;  %v1166_v52 = vrot.slane %v1146_v11, 2  ;;  %v1168_v45 = vrot.slane %v1146_v11, 4  ;;  %v1169_v34 = vrot.slane %v1146_v11, 5 }
 0x231   : > { %v1170_v33 = vrot.slane %v1146_v11, 6  ;;  %v1187_v60 = vsub.f32 %v1146_v11, %v1179_v47  ;;  %v1167_v58 = vrot.slane %v1146_v11, 3  ;;  %v1171_v12 = vrot.slane %v1146_v11, 7 }
 0x232   : > { %v1188_v57 = vsub.f32 %v1165_v53, %v1180_v6  ;;  %v1189_v42 = vsub.f32 %v1166_v52, %v1181_v54  ;;  %v1191_v39 = vsub.f32 %v1168_v45, %v1183_v29  ;;  %v1192_v59 = vsub.f32 %v1169_v34, %v1184_v13 }
 0x233   : > { %v1195_v7 = vmax.f32 %v1187_v60, 0.0  ;;  %v1193_v25 = vsub.f32 %v1170_v33, %v1185_v61  ;;  %v1190_v47 = vsub.f32 %v1167_v58, %v1182_v55  ;;  %v1186_v53 = vmul.f32 %v3140_v63, %v3140_v63 }
 0x234   : > { %v1196_v37 = vmax.f32 %v1188_v57, 0.0  ;;  %v1197_v15 = vmax.f32 %v1189_v42, 0.0  ;;  %v1199_v16 = vmax.f32 %v1191_v39, 0.0  ;;  %v1200_v20 = vmax.f32 %v1192_v59, 0.0 }
 0x235   : > { %v3133_v40 = vadd.f32 1e-05, %v1195_v7  ;;  %v1201_v54 = vmax.f32 %v1193_v25, 0.0  ;;  %v3156_v52 = vperm.slane %v3145_v18, 2  ;;  %v3162_v45 = vsub.f32 %v1171_v12, %v1186_v53 }
 0x236   : > { %v3135_v50 = vadd.f32 1e-05, %v1196_v37  ;;  %v3137_v10 = vadd.f32 1e-05, %v1197_v15  ;;  %v3148_v23 = vadd.f32 1e-05, %v1199_v16 }
 0x237   : > { %2188 = vrsqrt.f32 %v3133_v40  ;;  %v3150_v6 = vadd.f32 1e-05, %v1200_v20  ;;  %v3159_v11 = vadd.f32 1e-05, %v1201_v54  ;;  %v1198_v49 = vmax.f32 %v1190_v47, 0.0 }
 0x238   : > { %2190 = vrsqrt.f32 %v3135_v50  ;;  %v3168_v33 = vmul.f32 %v3156_v52, %v2719_v36  ;;  %v3172_v60 = vmul.f32 %v3156_v52, %v2796_v51  ;;  %v3179_v7 = vmul.f32 %v3156_v52, %v2870_v8 }
 0x239   : > { %2192 = vrsqrt.f32 %v3137_v10  ;;  %v3183_v39 = vmul.f32 %v3156_v52, %v2850_v41  ;;  %v3187_v59 = vmul.f32 %v3156_v52, %v2993_v4  ;;  %v3191_v37 = vadd.f32 1e-05, %v1198_v49 }
 0x23a   : > { %2194 = vrsqrt.f32 %v3148_v23  ;;  %v3195_v15 = vmul.f32 %v3156_v52, %v2984_v30  ;;  %v3199_v16 = vmul.f32 %v3156_v52, %v2996_v28  ;;  %v1291_v55 = vperm.slane %v3101_v56, 0 }
 0x23b   : > { %2196 = vrsqrt.f32 %v3150_v6  ;;  %v3208_v47 = vmul.f32 %v3156_v52, %v2987_v17  ;;  %v1292_v49 = vperm.slane %v3104_v26, 0  ;;  %vm1217_vm5 = vweird.f32 %v3133_v40 }
 0x23c   : > { %2198 = vrsqrt.f32 %v3159_v11  ;;  %vm1227_vm7 = vweird.f32 %v3135_v50  ;;  %v1202_v46 = vmax.f32 %v3162_v45, 0.0  ;;  %v3241_v45 = vmul.f32 %v3156_v52, %v3045_v35 }
 0x23d   : > { %v2189_v19 = vpop.eup %2188  ;;  %2200 = vrsqrt.f32 %v3191_v37 }
 0x23e   : > { %v2191_v29 = vpop.eup %2190  ;;  %v1212_v34 = vmul.f32 %v2189_v19, %v3133_v40  ;;  %vm1218_vm1 = vweird.f32 %v2189_v19  ;;  %v3233_v40 = vmul.f32 %v3156_v52, %v3033_v1  ;;  %v3251_v31 = vadd.f32 1e-05, %v1202_v46 }
 0x23f   : > { %v1222_v13 = vmul.f32 %v2191_v29, %v3135_v50  ;;  %v3175_v57 = vpop.eup %2192  ;;  %vm1228_vm2 = vweird.f32 %v2191_v29  ;;  %vm1219_vm15 = vmor %vm1217_vm5, %vm1218_vm1  ;;  %v1307_v50 = vsub.f32 %v2719_v36, %v1291_v55  ;;  %vm1257_vm1 = vweird.f32 %v3148_v23 }
 0x240   : > { %v1213_v42 = vmul.f32 %v2189_v19, %v1212_v34  ;;  %v3189_v61 = vpop.eup %2194  ;;  %v1232_v34 = vmul.f32 %v3175_v57, %v3137_v10  ;;  %vm3227_vm0 = vmor %vm1227_vm7, %vm1228_vm2  ;;  %2202 = vrsqrt.f32 %v3251_v31  ;;  %vm1238_vm7 = vweird.f32 %v3175_v57 }
 0x241   : > { %v1223_v58 = vmul.f32 %v2191_v29, %v1222_v13  ;;  %v3201_v20 = vpop.eup %2196  ;;  %v1252_v12 = vmul.f32 %v3189_v61, %v3148_v23  ;;  %vm1258_vm10 = vweird.f32 %v3189_v61 }
 0x242   : > { %v1214_v25 = vmul.f32 0.5, %v1213_v42  ;;  %v3210_v54 = vpop.eup %2198  ;;  %v1262_v13 = vmul.f32 %v3201_v20, %v3150_v6  ;;  %v1233_v2 = vmul.f32 %v3175_v57, %v1232_v34  ;;  %v1309_v34 = vsub.f32 %v2870_v8, %v1292_v49  ;;  %vm3268_vm5 = vmor %vm1257_vm1, %vm1258_vm10 }
 0x243   : > { %v1224_v53 = vmul.f32 0.5, %v1223_v58  ;;  %v1253_v56 = vmul.f32 %v3189_v61, %v1252_v12  ;;  %v1272_v21 = vmul.f32 %v3210_v54, %v3159_v11  ;;  %v1310_v8 = vsub.f32 %v2850_v41, %v1292_v49 }
 0x244   : > { %v1215_v42 = vsub.f32 1.5, %v1214_v25  ;;  %v1263_v58 = vmul.f32 %v3201_v20, %v1262_v13  ;;  %vm1268_vm2 = vweird.f32 %v3201_v20  ;;  %vm1278_vm10 = vweird.f32 %v3210_v54 }
 0x245   : > { %v1225_v27 = vsub.f32 1.5, %v1224_v53  ;;  %v1254_v62 = vmul.f32 0.5, %v1253_v56  ;;  %v1273_v12 = vmul.f32 %v3210_v54, %v1272_v21  ;;  %v1295_v56 = vperm.slane %v3110_v22, 0 }
 0x246   : > { %v1216_v26 = vmul.f32 %v2189_v19, %v1215_v42  ;;  %v1264_v42 = vmul.f32 0.5, %v1263_v58  ;;  %v3249_v58 = vpop.eup %2200  ;;  %vm1237_vm1 = vweird.f32 %v3137_v10 }
 0x247   : > { %v1226_v25 = vmul.f32 %v2191_v29, %v1225_v27  ;;  %v1255_v13 = vsub.f32 1.5, %v1254_v62  ;;  %v1308_v62 = vsub.f32 %v2796_v51, %v1291_v55  ;;  %v1242_v46 = vmul.f32 %v3249_v58, %v3191_v37 }
 0x248   : > { %v1220_v53 = vsel %vm1219_vm15, %v2189_v19, %v1216_v26  ;;  %v3244_v19 = vperm.slane %v3145_v18, 1  ;;  %v1234_v26 = vmul.f32 0.5, %v1233_v2  ;;  %v1265_v3 = vsub.f32 1.5, %v1264_v42 }
 0x249   : > { %v1323_v27 = vmul.f32 %v1220_v53, %v3145_v18  ;;  %v1230_v21 = vsel %vm3227_vm0, %v2191_v29, %v1226_v25  ;;  %v1274_v53 = vmul.f32 0.5, %v1273_v12  ;;  %v1256_v25 = vmul.f32 %v3189_v61, %v1255_v13 }
 0x24a   : > { %v3254_v29 = vmul.f32 %v1230_v21, %v3145_v18  ;;  %v1235_v12 = vsub.f32 1.5, %v1234_v26  ;;  %v1266_v42 = vmul.f32 %v3201_v20, %v1265_v3  ;;  %v1315_v21 = vsub.f32 %v2993_v4, %v1295_v56 }
 0x24b   : > { %v1339_v36 = vperm.slane %v1323_v27, 0  ;;  %v3261_v27 = vperm.slane %v3145_v18, 3  ;;  %v1275_v41 = vsub.f32 1.5, %v1274_v53  ;;  %v1260_v23 = vsel %vm3268_vm5, %v3189_v61, %v1256_v25 }
 0x24c   : > { %v1340_v49 = vperm.slane %v3254_v29, 0  ;;  %v1243_v26 = vmul.f32 %v3249_v58, %v1242_v46  ;;  %vm1267_vm15 = vweird.f32 %v3150_v6  ;;  %v1297_v53 = vperm.slane %v3122_v9, 0 }
 0x24d   : > { %v1355_v51 = vmul.f32 %v1339_v36, %v1307_v50  ;;  %v1356_v55 = vmul.f32 %v1339_v36, %v1308_v62  ;;  %v1316_v62 = vsub.f32 %v2984_v30, %v1295_v56  ;;  %v1296_v36 = vperm.slane %v3113_v32, 0  ;;  %vm3292_vm0 = vmor %vm1267_vm15, %vm1268_vm2  ;;  %v3302_v56 = vpop.eup %2202 }
 0x24e   : > { %v1236_v3 = vmul.f32 %v3175_v57, %v1235_v12  ;;  %v1357_v32 = vmul.f32 %v1340_v49, %v1309_v34  ;;  %v1270_v9 = vsel %vm3292_vm0, %v3201_v20, %v1266_v42  ;;  %v1276_v6 = vmul.f32 %v3210_v54, %v1275_v41  ;;  %vm3309_vm2 = vmor %vm1237_vm1, %vm1238_vm7 }
 0x24f   : > { %v1372_v2 = vadd.f32 %v3244_v19, %v1355_v51  ;;  %v1373_v22 = vadd.f32 %v3244_v19, %v1356_v55  ;;  %v1317_v25 = vsub.f32 %v2996_v28, %v1296_v36  ;;  %v1318_v51 = vsub.f32 %v2987_v17, %v1296_v36 }
 0x250   : > { %v3313_v34 = vmul.f32 0.5, %v1243_v26  ;;  %vm1277_vm5 = vweird.f32 %v3159_v11  ;;  %v1319_v20 = vsub.f32 %v3033_v1, %v1297_v53  ;;  %v1320_v55 = vsub.f32 %v3045_v35, %v1297_v53 }
 0x251   : > { %v1405_v50 = vadd.f32 %v3168_v33, %v1372_v2  ;;  %v1327_v33 = vmul.f32 %v1260_v23, %v3145_v18  ;;  %v1406_v4 = vadd.f32 %v3172_v60, %v1373_v22  ;;  %v1240_v17 = vsel %vm3309_vm2, %v3175_v57, %v1236_v3  ;;  %vm1279_vm7 = vmor %vm1277_vm5, %vm1278_vm10 }
 0x252   : > { %v1328_v10 = vmul.f32 %v1270_v9, %v3145_v18  ;;  %v1298_v46 = vperm.slane %v3140_v63, 0  ;;  %v1374_v1 = vadd.f32 %v3244_v19, %v1357_v32  ;;  %v1280_v35 = vsel %vm1279_vm7, %v3210_v54, %v1276_v6 }
 0x253   : > { %v1422_v61 = vadd.f32 %v3261_v27, %v1405_v50  ;;  %v1343_v28 = vperm.slane %v1327_v33, 0  ;;  %v1423_v11 = vadd.f32 %v3261_v27, %v1406_v4  ;;  %v1282_v2 = vmul.f32 %v3302_v56, %v3251_v31 }
 0x254   : > { %v1344_v13 = vperm.slane %v1328_v10, 0  ;;  %v1329_v41 = vmul.f32 %v1280_v35, %v3145_v18  ;;  %v1358_v22 = vmul.f32 %v1340_v49, %v1310_v8  ;;  %v3332_v23 = vmul.f32 %v1240_v17, %v3145_v18 }
 0x255   : > { %v1438_v29 = vmax.f32 %v1422_v61, 0.0  ;;  %v1363_v12 = vmul.f32 %v1343_v28, %v1315_v21  ;;  %v1364_v57 = vmul.f32 %v1343_v28, %v1316_v62  ;;  %v1245_v63 = vsub.f32 1.5, %v3313_v34 }
 0x256   : > { %v1283_v42 = vmul.f32 %v3302_v56, %v1282_v2  ;;  %v1365_v36 = vmul.f32 %v1344_v13, %v1317_v25  ;;  %v1366_v26 = vmul.f32 %v1344_v13, %v1318_v51  ;;  %v1439_v53 = vmax.f32 %v1423_v11, 0.0 }
 0x257   : > { %1518 = vmatmul.f32.vlgmr.msrb.gmra.mxu3 %v1438_v29  ;;  %1583 = vmatmul.f32.vlgmr.msrb.gmra.mxu0 %v1438_v29  ;;  %v1380_v50 = vadd.f32 %v3244_v19, %v1363_v12  ;;  %v1381_v54 = vadd.f32 %v3244_v19, %v1364_v57  ;;  %v1407_v21 = vadd.f32 %v3179_v7, %v1374_v1  ;;  %v1345_v62 = vperm.slane %v1329_v41, 0 }
 0x258   : > { %1648 = vmatmul.f32.vlgmr.msrb.gmra.mxu1 %v1438_v29  ;;  %v1284_v61 = vmul.f32 0.5, %v1283_v42  ;;  %v1382_v3 = vadd.f32 %v3244_v19, %v1365_v36  ;;  %v1383_v33 = vadd.f32 %v3244_v19, %v1366_v26  ;;  %vm1288_vm15 = vweird.f32 %v3302_v56 }
 0x259   : > { %v1413_v8 = vadd.f32 %v3187_v59, %v1380_v50  ;;  %v1414_v49 = vadd.f32 %v3195_v15, %v1381_v54  ;;  %v1367_v30 = vmul.f32 %v1345_v62, %v1319_v20  ;;  %v1368_v4 = vmul.f32 %v1345_v62, %v1320_v55 }
 0x25a   : > { %v1285_v32 = vsub.f32 1.5, %v1284_v61  ;;  %v1415_v59 = vadd.f32 %v3199_v16, %v1382_v3  ;;  %vm1287_vm0 = vweird.f32 %v3251_v31  ;;  %v1416_v15 = vadd.f32 %v3208_v47, %v1383_v33 }
 0x25b   : > { %v3345_v9 = vadd.f32 %v3261_v27, %v1413_v8  ;;  %v3348_v7 = vadd.f32 %v3261_v27, %v1414_v49  ;;  %v1384_v6 = vadd.f32 %v3244_v19, %v1367_v30  ;;  %v1385_v29 = vadd.f32 %v3244_v19, %v1368_v4  ;;  %vm1289_vm10 = vmor %vm1287_vm0, %vm1288_vm15 }
 0x25c   : > { %v1286_v25 = vmul.f32 %v3302_v56, %v1285_v32  ;;  %v1424_v51 = vadd.f32 %v3261_v27, %v1407_v21  ;;  %v1375_v60 = vadd.f32 %v3244_v19, %v1358_v22  ;;  %v1341_v34 = vperm.slane %v3332_v23, 0 }
 0x25d   : > { %v3360_v20 = vadd.f32 %v3261_v27, %v1415_v59  ;;  %v3365_v16 = vadd.f32 %v3261_v27, %v1416_v15  ;;  %v1417_v47 = vadd.f32 %v3233_v40, %v1384_v6  ;;  %v1418_v31 = vadd.f32 %v3241_v45, %v1385_v29 }
 0x25e   : > { %v1290_v55 = vsel %vm1289_vm10, %v3302_v56, %v1286_v25  ;;  %v3774_v17 = vperm.slane %v3107_v48, 0  ;;  %v1321_v10 = vsub.f32 %v3069_v5, %v1298_v46  ;;  %v1322_v1 = vsub.f32 %v3072_v24, %v1298_v46 }
 0x25f   : > { %1521 = vmatmul.f32.gmra.mxu3 %v1439_v53  ;;  %1586 = vmatmul.f32.gmra.mxu0 %v1439_v53  ;;  %v1330_v11 = vmul.f32 %v1290_v55, %v3145_v18  ;;  %v1246_v35 = vmul.f32 %v3249_v58, %v1245_v63  ;;  %vm1248_vm1 = vweird.f32 %v3249_v58  ;;  %v3379_v40 = vadd.f32 %v3261_v27, %v1417_v47 }
 0x260   : > { %1651 = vmatmul.f32.gmra.mxu1 %v1439_v53  ;;  %v1311_v28 = vsub.f32 %v2954_v44, %v3774_v17  ;;  %v3382_v45 = vadd.f32 %v3261_v27, %v1418_v31  ;;  %v1440_v56 = vmax.f32 %v1424_v51, 0.0  ;;  %v1408_v2 = vadd.f32 %v3183_v39, %v1375_v60 }
 0x261   : > { %v1346_v57 = vperm.slane %v1330_v11, 0  ;;  %vm1247_vm2 = vweird.f32 %v3191_v37  ;;  %v1403_v39 = vmul.f32 %v3156_v52, %v3069_v5  ;;  %v1404_v23 = vmul.f32 %v3156_v52, %v3072_v24 }
 0x262   : > { %v1359_v12 = vmul.f32 %v1341_v34, %v1311_v28  ;;  %vm3386_vm5 = vmor %vm1247_vm2, %vm1248_vm1  ;;  %v1425_v37 = vadd.f32 %v3261_v27, %v1408_v2  ;;  %v3777_v54 = vmov %v3774_v17  ;;  %v1294_v48 = vperm.slane %v3129_v14, 0 }
 0x263   : > { %v1369_v13 = vmul.f32 %v1346_v57, %v1321_v10  ;;  %v1370_v41 = vmul.f32 %v1346_v57, %v1322_v1  ;;  %v1250_v22 = vsel %vm3386_vm5, %v3249_v58, %v1246_v35  ;;  %v1312_v36 = vsub.f32 %v2935_v38, %v3777_v54 }
 0x264   : > { %v1376_v63 = vadd.f32 %v3244_v19, %v1359_v12  ;;  %v1393_v58 = vmul.f32 %v3156_v52, %v2954_v44  ;;  %v1326_v24 = vmul.f32 %v1250_v22, %v3145_v18  ;;  %v1441_v21 = vmax.f32 %v1425_v37, 0.0 }
 0x265   : > { %v1386_v42 = vadd.f32 %v3244_v19, %v1369_v13  ;;  %v1387_v50 = vadd.f32 %v3244_v19, %v1370_v41  ;;  %v1360_v53 = vmul.f32 %v1341_v34, %v1312_v36  ;;  %v1394_v33 = vmul.f32 %v3156_v52, %v2935_v38 }
 0x266   : > { %v1409_v62 = vadd.f32 %v1393_v58, %v1376_v63  ;;  %v1342_v3 = vperm.slane %v1326_v24, 0  ;;  %v1313_v30 = vsub.f32 %v2982_v0, %v1294_v48  ;;  %v1395_v6 = vmul.f32 %v3156_v52, %v2982_v0 }
 0x267   : > { %1524 = vmatmul.f32.gmra.mxu3 %v1440_v56  ;;  %1589 = vmatmul.f32.gmra.mxu0 %v1440_v56  ;;  %v1419_v26 = vadd.f32 %v1403_v39, %v1386_v42  ;;  %v1420_v5 = vadd.f32 %v1404_v23, %v1387_v50  ;;  %v1377_v49 = vadd.f32 %v3244_v19, %v1360_v53  ;;  %v1446_v28 = vmax.f32 %v3345_v9, 0.0 }
 0x268   : > { %1654 = vmatmul.f32.gmra.mxu1 %v1440_v56  ;;  %v1426_v44 = vadd.f32 %v3261_v27, %v1409_v62  ;;  %v1361_v59 = vmul.f32 %v1342_v3, %v1313_v30  ;;  %v1314_v29 = vsub.f32 %v2975_v43, %v1294_v48  ;;  %v1396_v47 = vmul.f32 %v3156_v52, %v2975_v43  ;;  %v3778_v56 = vld [vmem:[#allocation16_spill] sm:$0xff] }
 0x269   : > { %v3408_v61 = vadd.f32 %v3261_v27, %v1419_v26  ;;  %v3411_v8 = vadd.f32 %v3261_v27, %v1420_v5  ;;  %v1410_v32 = vadd.f32 %v1394_v33, %v1377_v49  ;;  %v1448_v43 = vmax.f32 %v3360_v20, 0.0 }
 0x26a   : > { %v1442_v4 = vmax.f32 %v1426_v44, 0.0  ;;  %v1378_v14 = vadd.f32 %v3244_v19, %v1361_v59  ;;  %v1362_v38 = vmul.f32 %v1342_v3, %v1314_v29  ;;  %v1449_v52 = vmax.f32 %v3365_v16, 0.0 }
 0x26b   : > { %v1427_v15 = vadd.f32 %v3261_v27, %v1410_v32  ;;  %v1451_v9 = vmax.f32 %v3382_v45, 0.0  ;;  %v1453_v20 = vmax.f32 %v3411_v8, 0.0  ;;  %vm3779_vm7 = vcmp.lt.s32.totalorder %v3778_v56, 7 }
 0x26c   : > { %v1411_v51 = vadd.f32 %v1395_v6, %v1378_v14  ;;  %v1379_v34 = vadd.f32 %v3244_v19, %v1362_v38  ;;  %v1447_v19 = vmax.f32 %v3348_v7, 0.0  ;;  %v1452_v7 = vmax.f32 %v3408_v61, 0.0  ;;  %vm3781_vm0 = vmmov %vm3779_vm7  ;;  %v2205_v38 = vld [vmem:[%s2612_s26 + $0x10] sm:$0xff] }
 0x26d   : > { %v1443_v25 = vmax.f32 %v1427_v15, 0.0  ;;  %vm3780_vm15 = vcmp.lt.s32.totalorder %v3778_v56, 1  ;;  %v3456_v37 = vperm.slane %v3145_v18, 4  ;;  %v3463_v54 = vperm.slane %v3145_v18, 5  ;;  %v2204_v18 = vld [vmem:[%s2612_s26 + $0x8] sm:$0xff]  ;;  %vm3787_vm1 = vmmov %vm3781_vm0 }
 0x26e   : > { %v1428_v60 = vadd.f32 %v3261_v27, %v1411_v51  ;;  %v1412_v55 = vadd.f32 %v1396_v47, %v1379_v34  ;;  %vm3783_vm10 = vmmov %vm3780_vm15 }
 0x26f   : > { %1527 = vmatmul.f32.gmra.mxu3 %v1441_v21  ;;  %1592 = vmatmul.f32.gmra.mxu0 %v1441_v21  ;;  %vm3793_vm5 = vmmov %vm3781_vm0 }
 0x270   : > { %1657 = vmatmul.f32.gmra.mxu1 %v1441_v21  ;;  %v1444_v31 = vmax.f32 %v1428_v60, 0.0  ;;  %v1429_v0 = vadd.f32 %v3261_v27, %v1412_v55  ;;  %v1450_v27 = vmax.f32 %v3379_v40, 0.0 }
 0x272   : > { %v1445_v17 = vmax.f32 %v1429_v0, 0.0 }
 0x277   : > { %1530 = vmatmul.f32.gmra.mxu3 %v1442_v4  ;;  %1595 = vmatmul.f32.gmra.mxu0 %v1442_v4 }
 0x278   : > { %1660 = vmatmul.f32.gmra.mxu1 %v1442_v4 }
 0x27f   : > { %1533 = vmatmul.f32.gmra.mxu3 %v1443_v25  ;;  %1598 = vmatmul.f32.gmra.mxu0 %v1443_v25 }
 0x280   : > { %1663 = vmatmul.f32.gmra.mxu1 %v1443_v25 }
 0x287   : > { %1536 = vmatmul.f32.gmra.mxu3 %v1444_v31  ;;  %1601 = vmatmul.f32.gmra.mxu0 %v1444_v31 }
 0x288   : > { %1666 = vmatmul.f32.gmra.mxu1 %v1444_v31 }
 0x28f   : > { %1539 = vmatmul.f32.gmra.mxu3 %v1445_v17  ;;  %1604 = vmatmul.f32.gmra.mxu0 %v1445_v17 }
 0x290   : > { %1669 = vmatmul.f32.gmra.mxu1 %v1445_v17 }
 0x297   : > { %1542 = vmatmul.f32.gmra.mxu3 %v1446_v28  ;;  %1607 = vmatmul.f32.gmra.mxu0 %v1446_v28 }
 0x298   : > { %1672 = vmatmul.f32.gmra.mxu1 %v1446_v28 }
 0x29f   : > { %1545 = vmatmul.f32.gmra.mxu3 %v1447_v19  ;;  %1610 = vmatmul.f32.gmra.mxu0 %v1447_v19 }
 0x2a0   : > { %1675 = vmatmul.f32.gmra.mxu1 %v1447_v19 }
 0x2a7   : > { %1548 = vmatmul.f32.gmra.mxu3 %v1448_v43  ;;  %1613 = vmatmul.f32.gmra.mxu0 %v1448_v43 }
 0x2a8   : > { %1678 = vmatmul.f32.gmra.mxu1 %v1448_v43 }
 0x2af   : > { %1551 = vmatmul.f32.gmra.mxu3 %v1449_v52  ;;  %1616 = vmatmul.f32.gmra.mxu0 %v1449_v52 }
 0x2b0   : > { %1681 = vmatmul.f32.gmra.mxu1 %v1449_v52 }
 0x2b7   : > { %1554 = vmatmul.f32.gmra.mxu3 %v1450_v27  ;;  %1619 = vmatmul.f32.gmra.mxu0 %v1450_v27 }
 0x2b8   : > { %1684 = vmatmul.f32.gmra.mxu1 %v1450_v27 }
 0x2bf   : > { %1557 = vmatmul.f32.gmra.mxu3 %v1451_v9  ;;  %1622 = vmatmul.f32.gmra.mxu0 %v1451_v9 }
 0x2c0   : > { %1687 = vmatmul.f32.gmra.mxu1 %v1451_v9 }
 0x2c7   : > { %1560 = vmatmul.f32.gmra.mxu3 %v1452_v7  ;;  %1625 = vmatmul.f32.gmra.mxu0 %v1452_v7 }
 0x2c8   : > { %1690 = vmatmul.f32.gmra.mxu1 %v1452_v7 }
 0x2cf   : > { %1563 = vmatmul.f32.gmra.mxu3 %v1453_v20  ;;  %1628 = vmatmul.f32.gmra.mxu0 %v1453_v20 }
 0x2d0   : > { %1693 = vmatmul.f32.gmra.mxu1 %v1453_v20 }
 0x2d4   : > { %v3437_v16 = vpop.f32.mrf.mxu0 }
 0x2d5   : > { %v3439_v10 = vpop.f32.mrf.mxu1 }
 0x2d6   : > { %v1745_v40 = vrot.slane %v3439_v10, 1 }
 0x2da   : > { %v3441_v11 = vpop.f32.mrf.mxu3 }
 0x2db   : > { %v1697_v57 = vrot.slane %v3441_v11, 7 }
 0x2dc   : > { %v1587_v1 = vpop.f32.mrf.mxu0 }
 0x2dd   : > { %v1652_v35 = vpop.f32.mrf.mxu1 }
 0x2de   : > { %v1746_v45 = vrot.slane %v1652_v35, 1 }
 0x2e0   : > { %v3448_v2 = vsel %vm3779_vm7, %v1745_v40, %v1746_v45 }
 0x2e2   : > { %v1522_v12 = vpop.f32.mrf.mxu3 }
 0x2e3   : > { %v1698_v46 = vrot.slane %v1522_v12, 7 }
 0x2e4   : > { %v1590_v13 = vpop.f32.mrf.mxu0 }
 0x2e5   : > { %v1727_v41 = vsel %vm3780_vm15, %v1697_v57, %v1698_v46  ;;  %v1655_v22 = vpop.f32.mrf.mxu1  ;;  %vm3799_vm15 = vmmov %vm3781_vm0 }
 0x2e6   : > { %v1794_v39 = vadd.f32 %v1727_v41, %v1587_v1  ;;  %v1747_v23 = vrot.slane %v1655_v22, 1 }
 0x2e8   : > { %v1774_v63 = vsel %vm3781_vm0, %v1746_v45, %v1747_v23  ;;  %v2206_v45 = vld [vmem:[%s2612_s26 + $0x18] sm:$0xff] }
 0x2e9   : > { %v1778_v50 = vsel %vm2780_vm3, %v1774_v63, 0.0  ;;  %vm3785_vm3 = vmmov %vm3781_vm0 }
 0x2ea   : > { %v1810_v36 = vadd.f32 %v1794_v39, %v1778_v50  ;;  %v1525_v58 = vpop.f32.mrf.mxu3 }
 0x2eb   : > { %v1699_v26 = vrot.slane %v1525_v58, 7 }
 0x2ec   : > { %v1827_v5 = vmul.f32 %v3456_v37, %v1810_v36  ;;  %v1593_v53 = vpop.f32.mrf.mxu0 }
 0x2ed   : > { %v1726_v24 = vsel %vm3783_vm10, %v1698_v46, %v1699_v26  ;;  %v1658_v21 = vpop.f32.mrf.mxu1 }
 0x2ee   : > { %v1844_v62 = vadd.f32 %v3463_v54, %v1827_v5  ;;  %v1731_v8 = vsel %vm2798_vm4, %v1726_v24, 0.0  ;;  %v1748_v48 = vrot.slane %v1658_v21, 1  ;;  %vm3786_vm4 = vmmov %vm3783_vm10  ;;  %v2207_v5 = vld [vmem:[%s2612_s26 + $0x20] sm:$0xff] }
 0x2ef   : > { %v1795_v44 = vadd.f32 %v1731_v8, %v1590_v13  ;;  %vm3789_vm2 = vmmov %vm3786_vm4 }
 0x2f0   : > { %v1860_v49 = vadd.f32 %v2204_v18, %v1844_v62  ;;  %v1773_v3 = vsel %vm3785_vm3, %v1747_v23, %v1748_v48  ;;  %vm3795_vm7 = vmmov %vm3789_vm2 }
 0x2f1   : > { %v1811_v33 = vadd.f32 %v1795_v44, %v1773_v3  ;;  %vm3805_vm10 = vmmov %vm3787_vm1 }
 0x2f2   : > { %v1876_v30 = vmax.f32 %v1860_v49, 0.0  ;;  %v1528_v4 = vpop.f32.mrf.mxu3 }
 0x2f3   : > { %v1828_v32 = vmul.f32 %v3456_v37, %v1811_v33  ;;  %v1700_v59 = vrot.slane %v1528_v4, 7 }
 0x2f4   : > { %1892 = vst [vmem:[%s3477_s24 + $0x8] sm:$0xff] %v1876_v30  ;;  %v1596_v15 = vpop.f32.mrf.mxu0 }
 0x2f5   : > { %v1845_v14 = vadd.f32 %v3463_v54, %v1828_v32  ;;  %v1725_v6 = vsel %vm3786_vm4, %v1699_v26, %v1700_v59  ;;  %v1661_v29 = vpop.f32.mrf.mxu1 }
 0x2f6   : > { %v1796_v25 = vadd.f32 %v1725_v6, %v1593_v53  ;;  %v1749_v51 = vrot.slane %v1661_v29, 1 }
 0x2f7   : > { %v1861_v60 = vadd.f32 %v2205_v38, %v1845_v14  ;;  %v2208_v14 = vld [vmem:[%s2612_s26 + $0x28] sm:$0xff] }
 0x2f8   : > { %v1772_v34 = vsel %vm3787_vm1, %v1748_v48, %v1749_v51 }
 0x2f9   : > { %v1877_v47 = vmax.f32 %v1861_v60, 0.0  ;;  %v1780_v55 = vsel %vm2811_vm6, %v1772_v34, 0.0  ;;  %vm3791_vm6 = vmmov %vm3781_vm0 }
 0x2fa   : > { %v1812_v0 = vadd.f32 %v1796_v25, %v1780_v55  ;;  %v1531_v17 = vpop.f32.mrf.mxu3 }
 0x2fb   : > { %1893 = vst [vmem:[%s3477_s24 + $0x10] sm:$0xff] %v1877_v47  ;;  %v1701_v28 = vrot.slane %v1531_v17, 7 }
 0x2fc   : > { %v1829_v19 = vmul.f32 %v3456_v37, %v1812_v0  ;;  %v1599_v43 = vpop.f32.mrf.mxu0 }
 0x2fd   : > { %v1724_v52 = vsel %vm3789_vm2, %v1700_v59, %v1701_v28  ;;  %v1664_v27 = vpop.f32.mrf.mxu1 }
 0x2fe   : > { %v1846_v9 = vadd.f32 %v3463_v54, %v1829_v19  ;;  %v1733_v20 = vsel %vm2843_vm8, %v1724_v52, 0.0  ;;  %v1750_v1 = vrot.slane %v1664_v27, 1  ;;  %vm3792_vm8 = vmmov %vm3789_vm2  ;;  %v2209_v19 = vld [vmem:[%s2612_s26 + $0x30] sm:$0xff] }
 0x2ff   : > { %v1797_v35 = vadd.f32 %v1733_v20, %v1596_v15 }
 0x300   : > { %v1862_v12 = vadd.f32 %v2206_v45, %v1846_v9  ;;  %v1771_v46 = vsel %vm3791_vm6, %v1749_v51, %v1750_v1 }
 0x301   : > { %v1813_v13 = vadd.f32 %v1797_v35, %v1771_v46 }
 0x302   : > { %v1878_v41 = vmax.f32 %v1862_v12, 0.0  ;;  %v1534_v22 = vpop.f32.mrf.mxu3 }
 0x303   : > { %v1830_v39 = vmul.f32 %v3456_v37, %v1813_v13  ;;  %v1702_v23 = vrot.slane %v1534_v22, 7 }
 0x304   : > { %1894 = vst [vmem:[%s3477_s24 + $0x18] sm:$0xff] %v1878_v41  ;;  %v1602_v63 = vpop.f32.mrf.mxu0 }
 0x305   : > { %v1847_v42 = vadd.f32 %v3463_v54, %v1830_v39  ;;  %v1723_v50 = vsel %vm3792_vm8, %v1701_v28, %v1702_v23  ;;  %v1667_v36 = vpop.f32.mrf.mxu1 }
 0x306   : > { %v1798_v58 = vadd.f32 %v1723_v50, %v1599_v43  ;;  %v1751_v26 = vrot.slane %v1667_v36, 1 }
 0x307   : > { %v1863_v53 = vadd.f32 %v2207_v5, %v1847_v42  ;;  %v2210_v42 = vld [vmem:[%s2612_s26 + $0x38] sm:$0xff] }
 0x308   : > { %v1770_v24 = vsel %vm3793_vm5, %v1750_v1, %v1751_v26 }
 0x309   : > { %v1879_v21 = vmax.f32 %v1863_v53, 0.0  ;;  %v1782_v61 = vsel %vm2886_vm9, %v1770_v24, 0.0  ;;  %vm3797_vm9 = vmmov %vm3781_vm0 }
 0x30a   : > { %v1814_v8 = vadd.f32 %v1798_v58, %v1782_v61  ;;  %v1537_v48 = vpop.f32.mrf.mxu3  ;;  %vm3801_vm0 = vmmov %vm3789_vm2 }
 0x30b   : > { %1895 = vst [vmem:[%s3477_s24 + $0x20] sm:$0xff] %v1879_v21  ;;  %v1703_v44 = vrot.slane %v1537_v48, 7  ;;  %vm3807_vm3 = vmmov %vm3801_vm0 }
 0x30c   : > { %v1831_v18 = vmul.f32 %v3456_v37, %v1814_v8  ;;  %v1605_v49 = vpop.f32.mrf.mxu0  ;;  %vm3815_vm8 = vmmov %vm3801_vm0 }
 0x30d   : > { %v1722_v3 = vsel %vm3795_vm7, %v1702_v23, %v1703_v44  ;;  %v1670_v33 = vpop.f32.mrf.mxu1 }
 0x30e   : > { %v1848_v30 = vadd.f32 %v3463_v54, %v1831_v18  ;;  %v1735_v32 = vsel %vm2898_vm11, %v1722_v3, 0.0  ;;  %v1752_v59 = vrot.slane %v1670_v33, 1  ;;  %vm3798_vm11 = vmmov %vm3789_vm2  ;;  %v2211_v18 = vld [vmem:[%s2612_s26 + $0x40] sm:$0xff] }
 0x30f   : > { %v1799_v15 = vadd.f32 %v1735_v32, %v1602_v63  ;;  %vm3812_vm2 = vmmov %vm3793_vm5 }
 0x310   : > { %v1864_v6 = vadd.f32 %v2208_v14, %v1848_v30  ;;  %v1769_v29 = vsel %vm3797_vm9, %v1751_v26, %v1752_v59  ;;  %vm3818_vm7 = vmmov %vm3812_vm2 }
 0x311   : > { %v1815_v25 = vadd.f32 %v1799_v15, %v1769_v29  ;;  %vm3819_vm9 = vmmov %vm3801_vm0 }
 0x312   : > { %v1880_v51 = vmax.f32 %v1864_v6, 0.0  ;;  %v1540_v38 = vpop.f32.mrf.mxu3 }
 0x313   : > { %v1832_v60 = vmul.f32 %v3456_v37, %v1815_v25  ;;  %v1704_v34 = vrot.slane %v1540_v38, 7  ;;  %v3808_v38 = vld [vmem:[#allocation20_spill] sm:$0xff] }
 0x314   : > { %1896 = vst [vmem:[%s3477_s24 + $0x28] sm:$0xff] %v1880_v51  ;;  %v1608_v47 = vpop.f32.mrf.mxu0  ;;  %vm3809_vm4 = vnez %v3808_v38 }
 0x315   : > { %v1849_v31 = vadd.f32 %v3463_v54, %v1832_v60  ;;  %v1721_v55 = vsel %vm3798_vm11, %v1703_v44, %v1704_v34  ;;  %v1673_v0 = vpop.f32.mrf.mxu1  ;;  %vm3820_vm11 = vmmov %vm3812_vm2 }
 0x316   : > { %v1800_v17 = vadd.f32 %v1721_v55, %v1605_v49  ;;  %v1753_v28 = vrot.slane %v1673_v0, 1 }
 0x317   : > { %v1865_v43 = vadd.f32 %v2209_v19, %v1849_v31  ;;  %v2212_v31 = vld [vmem:[%s2612_s26 + $0x48] sm:$0xff] }
 0x318   : > { %v1768_v52 = vsel %vm3799_vm15, %v1752_v59, %v1753_v28 }
 0x319   : > { %v1881_v27 = vmax.f32 %v1865_v43, 0.0  ;;  %v1784_v7 = vsel %vm2907_vm12, %v1768_v52, 0.0  ;;  %vm3803_vm12 = vmmov %vm3787_vm1 }
 0x31a   : > { %v1816_v20 = vadd.f32 %v1800_v17, %v1784_v7  ;;  %v1543_v1 = vpop.f32.mrf.mxu3 }
 0x31b   : > { %1897 = vst [vmem:[%s3477_s24 + $0x30] sm:$0xff] %v1881_v27  ;;  %v1705_v35 = vrot.slane %v1543_v1, 7 }
 0x31c   : > { %v1833_v45 = vmul.f32 %v3456_v37, %v1816_v20  ;;  %v1611_v12 = vpop.f32.mrf.mxu0 }
 0x31d   : > { %v1720_v46 = vsel %vm3801_vm0, %v1704_v34, %v1705_v35  ;;  %v1676_v13 = vpop.f32.mrf.mxu1 }
 0x31e   : > { %v1850_v41 = vadd.f32 %v3463_v54, %v1833_v45  ;;  %v1737_v39 = vsel %vm2920_vm13, %v1720_v46, 0.0  ;;  %v1754_v23 = vrot.slane %v1676_v13, 1  ;;  %vm3804_vm13 = vmmov %vm3801_vm0 }
 0x31f   : > { %v1801_v63 = vadd.f32 %v1737_v39, %v1608_v47 }
 0x320   : > { %v1866_v50 = vadd.f32 %v2210_v42, %v1850_v41  ;;  %v1767_v36 = vsel %vm3803_vm12, %v1753_v28, %v1754_v23  ;;  %v3813_v41 = vld [vmem:[#allocation30_spill] sm:$0xff] }
 0x321   : > { %v1817_v58 = vadd.f32 %v1801_v63, %v1767_v36  ;;  %vm3814_vm6 = vnez %v3813_v41 }
 0x322   : > { %v1882_v26 = vmax.f32 %v1866_v50, 0.0  ;;  %v1546_v5 = vpop.f32.mrf.mxu3 }
 0x323   : > { %v1834_v53 = vmul.f32 %v3456_v37, %v1817_v58  ;;  %v1706_v24 = vrot.slane %v1546_v5, 7 }
 0x324   : > { %1898 = vst [vmem:[%s3477_s24 + $0x38] sm:$0xff] %v1882_v26  ;;  %v1614_v21 = vpop.f32.mrf.mxu0  ;;  %v3816_v26 = vld [vmem:[#allocation22_spill] sm:$0xff] }
 0x325   : > { %v1851_v62 = vadd.f32 %v3463_v54, %v1834_v53  ;;  %v1719_v61 = vsel %vm3804_vm13, %v1705_v35, %v1706_v24  ;;  %v1679_v8 = vpop.f32.mrf.mxu1  ;;  %v2213_v35 = vld [vmem:[%s2612_s26 + $0x50] sm:$0xff]  ;;  %vm3817_vm5 = vnez %v3816_v26  ;;  %vm3825_vm13 = vmmov %vm3812_vm2 }
 0x326   : > { %v1802_v48 = vadd.f32 %v1719_v61, %v1611_v12  ;;  %v1755_v44 = vrot.slane %v1679_v8, 1 }
 0x327   : > { %v1867_v49 = vadd.f32 %v2211_v18, %v1851_v62 }
 0x328   : > { %v1766_v3 = vsel %vm3805_vm10, %v1754_v23, %v1755_v44  ;;  %vm3826_vm10 = vmmov %vm3812_vm2 }
 0x329   : > { %v1883_v33 = vmax.f32 %v1867_v49, 0.0  ;;  %v1786_v4 = vsel %vm2939_vm14, %v1766_v3, 0.0  ;;  %vm3810_vm14 = vmmov %vm3787_vm1 }
 0x32a   : > { %v1818_v32 = vadd.f32 %v1802_v48, %v1786_v4  ;;  %v1549_v59 = vpop.f32.mrf.mxu3  ;;  %vm3811_vm1 = vmmov %vm3801_vm0 }
 0x32b   : > { %1899 = vst [vmem:[%s3477_s24 + $0x40] sm:$0xff] %v1883_v33  ;;  %v1707_v15 = vrot.slane %v1549_v59, 7 }
 0x32c   : > { %v1835_v14 = vmul.f32 %v3456_v37, %v1818_v32  ;;  %v1617_v29 = vpop.f32.mrf.mxu0 }
 0x32d   : > { %v1718_v6 = vsel %vm3807_vm3, %v1706_v24, %v1707_v15  ;;  %v1682_v25 = vpop.f32.mrf.mxu1  ;;  %vm3827_vm3 = vmmov %vm3801_vm0 }
 0x32e   : > { %v1852_v51 = vadd.f32 %v3463_v54, %v1835_v14  ;;  %v1739_v60 = vsel %vm3809_vm4, %v1718_v6, 0.0  ;;  %v1756_v34 = vrot.slane %v1682_v25, 1  ;;  %v3821_v25 = vld [vmem:[#allocation31_spill] sm:$0xff]  ;;  %vm3828_vm4 = vmmov %vm3801_vm0 }
 0x32f   : > { %v1803_v47 = vadd.f32 %v1739_v60, %v1614_v21  ;;  %v2214_v21 = vld [vmem:[%s2612_s26 + $0x58] sm:$0xff]  ;;  %vm3822_vm15 = vnez %v3821_v25 }
 0x330   : > { %v1868_v55 = vadd.f32 %v2212_v31, %v1852_v51  ;;  %v1765_v0 = vsel %vm3810_vm14, %v1755_v44, %v1756_v34 }
 0x331   : > { %v1819_v17 = vadd.f32 %v1803_v47, %v1765_v0 }
 0x332   : > { %v1884_v28 = vmax.f32 %v1868_v55, 0.0  ;;  %v1552_v19 = vpop.f32.mrf.mxu3 }
 0x333   : > { %v1836_v43 = vmul.f32 %v3456_v37, %v1819_v17  ;;  %v1708_v52 = vrot.slane %v1552_v19, 7 }
 0x334   : > { %1900 = vst [vmem:[%s3477_s24 + $0x48] sm:$0xff] %v1884_v28  ;;  %v1620_v12 = vpop.f32.mrf.mxu0  ;;  %v3823_v28 = vld [vmem:[#allocation25_spill] sm:$0xff] }
 0x335   : > { %v1853_v27 = vadd.f32 %v3463_v54, %v1836_v43  ;;  %v1717_v9 = vsel %vm3811_vm1, %v1707_v15, %v1708_v52  ;;  %v1685_v7 = vpop.f32.mrf.mxu1  ;;  %v2215_v15 = vld [vmem:[%s2612_s26 + $0x60] sm:$0xff]  ;;  %vm3824_vm12 = vnez %v3823_v28 }
 0x336   : > { %v1804_v20 = vadd.f32 %v1717_v9, %v1617_v29  ;;  %v1757_v1 = vrot.slane %v1685_v7, 1 }
 0x337   : > { %v1869_v45 = vadd.f32 %v2213_v35, %v1853_v27  ;;  %v2216_v27 = vld [vmem:[%s2612_s26 + $0x68] sm:$0xff] }
 0x338   : > { %v1764_v46 = vsel %vm3812_vm2, %v1756_v34, %v1757_v1 }
 0x339   : > { %v1885_v13 = vmax.f32 %v1869_v45, 0.0  ;;  %v1788_v22 = vsel %vm3814_vm6, %v1764_v46, 0.0 }
 0x33a   : > { %v1820_v39 = vadd.f32 %v1804_v20, %v1788_v22  ;;  %v1555_v23 = vpop.f32.mrf.mxu3 }
 0x33b   : > { %1901 = vst [vmem:[%s3477_s24 + $0x50] sm:$0xff] %v1885_v13  ;;  %v1709_v63 = vrot.slane %v1555_v23, 7  ;;  %v3829_v23 = vld [vmem:[#allocation17_spill] sm:$0xff] }
 0x33c   : > { %v1837_v42 = vmul.f32 %v3456_v37, %v1820_v39  ;;  %v1623_v8 = vpop.f32.mrf.mxu0  ;;  %vm3830_vm14 = vnez %v3829_v23 }
 0x33d   : > { %v1716_v50 = vsel %vm3815_vm8, %v1708_v52, %v1709_v63  ;;  %v1688_v36 = vpop.f32.mrf.mxu1 }
 0x33e   : > { %v1854_v58 = vadd.f32 %v3463_v54, %v1837_v42  ;;  %v1741_v5 = vsel %vm3817_vm5, %v1716_v50, 0.0  ;;  %v1758_v53 = vrot.slane %v1688_v36, 1  ;;  %v3831_v42 = vld [vmem:[#allocation32_spill] sm:$0xff]  ;;  %v2217_v50 = vld [vmem:[%s2612_s26 + $0x70] sm:$0xff] }
 0x33f   : > { %v1805_v24 = vadd.f32 %v1741_v5, %v1620_v12  ;;  %vm3832_vm1 = vnez %v3831_v42 }
 0x340   : > { %v1870_v62 = vadd.f32 %v2214_v21, %v1854_v58  ;;  %v1763_v61 = vsel %vm3818_vm7, %v1757_v1, %v1758_v53  ;;  %v2219_v21 = vld [vmem:[%s2612_s26] sm:$0xff] }
 0x341   : > { %v1821_v48 = vadd.f32 %v1805_v24, %v1763_v61 }
 0x342   : > { %v1886_v44 = vmax.f32 %v1870_v62, 0.0  ;;  %v1558_v18 = vpop.f32.mrf.mxu3 }
 0x343   : > { %v1838_v49 = vmul.f32 %v3456_v37, %v1821_v48  ;;  %v1710_v3 = vrot.slane %v1558_v18, 7 }
 0x344   : > { %1902 = vst [vmem:[%s3477_s24 + $0x58] sm:$0xff] %v1886_v44  ;;  %v1626_v34 = vpop.f32.mrf.mxu0 }
 0x345   : > { %v1855_v33 = vadd.f32 %v3463_v54, %v1838_v49  ;;  %v1715_v30 = vsel %vm3819_vm9, %v1709_v63, %v1710_v3  ;;  %v1691_v4 = vpop.f32.mrf.mxu1 }
 0x346   : > { %v1806_v32 = vadd.f32 %v1715_v30, %v1623_v8  ;;  %v1759_v59 = vrot.slane %v1691_v4, 1 }
 0x347   : > { %v1871_v14 = vadd.f32 %v2215_v15, %v1855_v33 }
 0x348   : > { %v1762_v6 = vsel %vm3820_vm11, %v1758_v53, %v1759_v59 }
 0x349   : > { %v1887_v29 = vmax.f32 %v1871_v14, 0.0  ;;  %v1790_v51 = vsel %vm3822_vm15, %v1762_v6, 0.0 }
 0x34a   : > { %v1822_v38 = vadd.f32 %v1806_v32, %v1790_v51  ;;  %v1561_v60 = vpop.f32.mrf.mxu3 }
 0x34b   : > { %1903 = vst [vmem:[%s3477_s24 + $0x60] sm:$0xff] %v1887_v29  ;;  %v1711_v47 = vrot.slane %v1561_v60, 7 }
 0x34c   : > { %v1839_v31 = vmul.f32 %v3456_v37, %v1822_v38  ;;  %v1629_v13 = vpop.f32.mrf.mxu0 }
 0x34d   : > { %v1714_v55 = vsel %vm3801_vm0, %v1710_v3, %v1711_v47  ;;  %v1694_v0 = vpop.f32.mrf.mxu1 }
 0x34e   : > { %v1856_v17 = vadd.f32 %v3463_v54, %v1839_v31  ;;  %v1743_v19 = vsel %vm3824_vm12, %v1714_v55, 0.0  ;;  %v1760_v43 = vrot.slane %v1694_v0, 1 }
 0x34f   : > { %v1807_v52 = vadd.f32 %v1743_v19, %v1626_v34 }
 0x350   : > { %v1872_v9 = vadd.f32 %v2216_v27, %v1856_v17  ;;  %v1761_v7 = vsel %vm3825_vm13, %v1759_v59, %v1760_v43  ;;  %v1776_v46 = vsel %vm3826_vm10, %v1760_v43, %v1745_v40 }
 0x351   : > { %v1823_v20 = vadd.f32 %v1807_v52, %v1761_v7  ;;  %v1792_v40 = vsel %vm3832_vm1, %v1776_v46, 0.0 }
 0x352   : > { %v1888_v1 = vmax.f32 %v1872_v9, 0.0  ;;  %v1564_v35 = vpop.f32.mrf.mxu3 }
 0x353   : > { %v1840_v45 = vmul.f32 %v3456_v37, %v1823_v20  ;;  %v1712_v12 = vrot.slane %v1564_v35, 7 }
 0x354   : > { %1904 = vst [vmem:[%s3477_s24 + $0x68] sm:$0xff] %v1888_v1 }
 0x355   : > { %v1857_v41 = vadd.f32 %v3463_v54, %v1840_v45  ;;  %v1713_v22 = vsel %vm3827_vm3, %v1711_v47, %v1712_v12  ;;  %v1728_v39 = vsel %vm3828_vm4, %v1712_v12, %v1697_v57 }
 0x356   : > { %v1729_v63 = vsel %vm3830_vm14, %v1728_v39, 0.0  ;;  %v1808_v10 = vadd.f32 %v1713_v22, %v1629_v13 }
 0x357   : > { %v1873_v36 = vadd.f32 %v2217_v50, %v1857_v41  ;;  %v1793_v58 = vadd.f32 %v1729_v63, %v3437_v16 }
 0x358   : > { %v1824_v26 = vadd.f32 %v1808_v10, %v1792_v40 }
 0x359   : > { %v1889_v11 = vmax.f32 %v1873_v36, 0.0  ;;  %v1809_v56 = vadd.f32 %v1793_v58, %v3448_v2  ;;  %v2218_v2 = vld [vmem:[%s2612_s26 + $0x78] sm:$0xff] }
 0x35a   : > { %v1841_v57 = vmul.f32 %v3456_v37, %v1824_v26 }
 0x35b   : > { %1905 = vst [vmem:[%s3477_s24 + $0x70] sm:$0xff] %v1889_v11  ;;  %v1826_v5 = vmul.f32 %v3456_v37, %v1809_v56 }
 0x35c   : > { %v1858_v53 = vadd.f32 %v3463_v54, %v1841_v57 }
 0x35d   : > { %v1843_v16 = vadd.f32 %v3463_v54, %v1826_v5 }
 0x35e   : > { %v1874_v24 = vadd.f32 %v2218_v2, %v1858_v53 }
 0x35f   : > { %v1859_v62 = vadd.f32 %v2219_v21, %v1843_v16 }
 0x360   : > { %v1890_v61 = vmax.f32 %v1874_v24, 0.0 }
 0x361   : > { %v1875_v8 = vmax.f32 %v1859_v62, 0.0 }
 0x362   : > { %1906 = vst [vmem:[%s3477_s24 + $0x78] sm:$0xff] %v1890_v61 }
 0x363   : > { %1891 = vst [vmem:[%s3477_s24] sm:$0xff] %v1875_v8 }
 0x364   : > { %2397 = shalt.err (!%p2394_p10)
}
 0x365   : > { %s2454_s6 = smov 128   ;;  %s2455_s26 = smov 8  }
 0x366   : > { %2113 = dma.vmem_to_hbm [thread:$0]  (%p2573_p3), %s1922_s22, 2048, %s1924_s10, %s1908_s14, %s2454_s6, %s2454_s6, %s2455_s26  }
 0x367 PF: > { %s1938_s24 = sand.u32 1, %s2432_s18   ;;  %p3833_p12 = scmp.ge.s32.totalorder %s2444_s21, 2 }
 0x368   : > { %s1939_s29 = scalar_lea.sflag [#allocation4], %s1938_s24 }
 0x369   : > { %p2133_p13 = pnand %p3833_p12, %p2521_p6 }
 0x36b   : > { %p2134_p0 = pneg %p2133_p13 }
 0x36d   : > { %2427 = dma.done.wait (%p2134_p0), %s1939_s29, 2048  }
 0x36e   : > { %2429 = vsyncadd (%p2134_p0), %s1939_s29, 4294965248  ;;  %p20_p5 = scmp.ge.s32.totalorder %s2563_s13, 4   ;;  %s3834_s18 = smov %s2436_s19 }
 0x36f   : > { %s3835_s19 = smov %s2440_s20  ;;  %s3836_s20 = smov %s2579_s11 }
 0x370   : > { %s3837_s21 = smov %s2563_s13  ;;  %22 = sbr.rel (!%p20_p5) target bundleno = 7 (0x7), region = 101 }
 0x375   :  { %1945 = vsyncpa [#allocation3], 1 }
 0x376   :  { %1947 = vsyncpa [#allocation3 + $0x1], 1 }
 0x377   :  { %1948 = vsyncpa [#allocation6], 1 }
 0x378   :  { %1949 = vsyncpa [#allocation9], 1 }
 0x379   :  { %1950 = vsyncpa [#allocation4], 1 }
 0x37a   :  { %1952 = vsyncpa [#allocation4 + $0x1], 1 }

</bundles_post_ra>
